<compile_context>
chip_gen: v7x
topology: tpu7x:2x2x1
jax: 0.10.0
libtpu: 0.0.40
codegen_flags: <defaults>
</compile_context>

<pallas_src>
import jax
import jax.numpy as jnp
from jax.experimental import pallas as pl
from jax.experimental.pallas import tpu as pltpu

# ---------------- model hyper-parameters (small, TPU-friendly) --------------
IMG_N, IMG_M, IMG_Z = 8, 8, 4            # obs_space['image'] = (8, 8, 4)
IMG_FLAT = IMG_N * IMG_M * IMG_Z          # 256
VOCAB = 32                                # obs_space['text']
SEQ = 8                                   # text sequence length
WORD_EMB = 32                             # word_embedding_size
TXT_HID = 128                             # text_embedding_size (GRU hidden)
IMG_EMB = 64                              # image embedding size
N_ACTIONS = 8                             # action_space.n
BATCH = 2

# Packed bf16 weight-blob row offsets (all multiples of 128 -> tile aligned).
_W1, _W2, _W3, _WA1I, _WA1T, _WA2 = 0, 256, 384, 512, 640, 768
_W_BLOB_ROWS = 896
# f32 const-blob rows: b1, b2, b3, ba1, ba2, bhn
_B1, _B2, _B3, _BA1, _BA2, _BHN = 0, 1, 2, 3, 4, 5


# --------------------------------- kernel -----------------------------------
def qmodel_kernel(x_ref, w_ref, whh_ref, gi_ref, c_ref, out_ref):
    bf16, f32 = jnp.bfloat16, jnp.float32
    B = x_ref.shape[0]
    H = TXT_HID

    # ---- image_conv: Linear->ReLU x3 at padded 128-lane width -------------
    # (real widths 128/64/64; zero-padded weight rows/cols keep the padded
    #  activation columns exactly zero through every ReLU)
    h = jnp.maximum(
        jnp.dot(x_ref[...].astype(bf16), w_ref[_W1:_W1 + 256, :],
                preferred_element_type=f32) + c_ref[_B1:_B1 + 1, :], 0.0)
    h = jnp.maximum(
        jnp.dot(h.astype(bf16), w_ref[_W2:_W2 + 128, :],
                preferred_element_type=f32) + c_ref[_B2:_B2 + 1, :], 0.0)
    img = jnp.maximum(
        jnp.dot(h.astype(bf16), w_ref[_W3:_W3 + 128, :],
                preferred_element_type=f32) + c_ref[_B3:_B3 + 1, :], 0.0)

    # ---- GRU over text ------------------------------------------------------
    # gi_ref (B, T, 3H) already holds  emb(token) @ W_ih + b_ih + [b_hr|b_hz|0]
    # (fused table, gathered in the wrapper).  Only `h_prev @ W_hh` is serial.
    gi_all = gi_ref[...]                                   # one dense load
    T = gi_all.shape[1]
    whh = whh_ref[...]                                     # (H, 3H) bf16
    bhn = jnp.broadcast_to(c_ref[_BHN:_BHN + 1, :], (B, H))  # hoisted broadcast

    h_txt = jnp.zeros((B, H), f32)
    for t in range(T):            # fully unrolled recurrence (T is static)
        gi = gi_all[:, t, :]                               # (B, 3H) f32
        gh = jnp.dot(h_txt.astype(bf16), whh, preferred_element_type=f32)
        r = jax.nn.sigmoid(gi[:, 0:H] + gh[:, 0:H])
        z = jax.nn.sigmoid(gi[:, H:2 * H] + gh[:, H:2 * H])
        n = jnp.tanh(gi[:, 2 * H:3 * H] + r * (gh[:, 2 * H:3 * H] + bhn))
        h_txt = (1.0 - z) * n + z * h_txt

    # ---- actor: Linear(64+128, 64) -> Tanh -> Linear(64, A) ----------------
    # concat(img, h_txt) @ Wa1 == img @ Wa1[:64] + h_txt @ Wa1[64:]
    a1 = jnp.tanh(
        jnp.dot(img.astype(bf16), w_ref[_WA1I:_WA1I + 128, :],
                preferred_element_type=f32)
        + jnp.dot(h_txt.astype(bf16), w_ref[_WA1T:_WA1T + 128, :],
                  preferred_element_type=f32)
        + c_ref[_BA1:_BA1 + 1, :])
    out = (jnp.dot(a1.astype(bf16), w_ref[_WA2:_WA2 + 128, :],
                   preferred_element_type=f32) + c_ref[_BA2:_BA2 + 1, :])
    out_ref[...] = out[:, :N_ACTIONS]


# ------------------------------ wrapper --------------------------------------
def _qmodel_forward(image, text, p):
    """image: (B, n, m, z) f32, text: (B, T) int32 -> (B, N_ACTIONS) f32."""
    B = image.shape[0]
    # The (B,n,m,z)->(B,z,n,m) permutation is pre-folded into w_blob's W1 rows.
    x = image.reshape(B, -1)                                # (B, IMG_FLAT)
    # Fused embedding + GRU input projection + folded biases: one gather,
    # (B, T, 3H) layout -> dense (8, 384) tiles in VMEM, no transpose.
    gi = p["gi_table"][text]                                # (B, T, 3*TXT_HID)

    args = (x, p["w_blob"], p["whh"], gi, p["consts"])
    vmem = pl.BlockSpec(memory_space=pltpu.MemorySpace.VMEM)
    return pl.pallas_call(
        qmodel_kernel,
        out_shape=jax.ShapeDtypeStruct((B, N_ACTIONS), jnp.float32),
        in_specs=[vmem] * len(args),
        out_specs=vmem,
    )(*args)


qmodel_forward = jax.jit(_qmodel_forward)


# --------------------------- parameter init ----------------------------------
def _normed_linear(key, out_dim, in_dim):
    """nn.Linear weights under init_params: N(0,1), rows scaled to unit L2."""
    w = jax.random.normal(key, (out_dim, in_dim), jnp.float32)
    w = w / jnp.sqrt(jnp.sum(w * w, axis=1, keepdims=True))
    return w.T  # store as (in, out) for x @ W


def make_params(key):
    ks = jax.random.split(key, 10)
    f32, bf16 = jnp.float32, jnp.bfloat16
    p = {}

    # ---- image_conv linears (256->128->64->64), biases zero (init_params) ---
    w1 = _normed_linear(ks[0], IMG_FLAT // 2, IMG_FLAT).astype(bf16)  # (256,128)
    # absorb the (n,m,z)->(z,n,m) flatten permutation into w1's rows:
    old_idx = jnp.arange(IMG_FLAT).reshape(IMG_Z, IMG_N, IMG_M)
    perm = jnp.transpose(old_idx, (1, 2, 0)).reshape(-1)
    w1_perm = w1[perm]                 # rows in (n,m,z)-flatten order (kernel)
    w2 = _normed_linear(ks[1], IMG_FLAT // 4, IMG_FLAT // 2).astype(bf16)  # (128,64)
    w3 = _normed_linear(ks[2], IMG_EMB, IMG_FLAT // 4).astype(bf16)        # (64,64)

    # ---- word embedding + GRU ------------------------------------------------
    embedding = jax.random.normal(ks[3], (VOCAB, WORD_EMB), f32)
    k = 1.0 / jnp.sqrt(float(TXT_HID))
    wih = jax.random.uniform(ks[4], (WORD_EMB, 3 * TXT_HID), f32, -k, k)
    whh = jax.random.uniform(ks[5], (TXT_HID, 3 * TXT_HID), f32, -k, k)
    bih = jax.random.uniform(ks[6], (1, 3 * TXT_HID), f32, -k, k)
    bhh = jax.random.uniform(ks[7], (1, 3 * TXT_HID), f32, -k, k)
    # fused per-token input-gate table:  emb @ W_ih + b_ih + [b_hr | b_hz | 0]
    # (b_hn must stay inside r*(...) per GRU equations, so it is kept apart)
    bhh_rz = jnp.concatenate(
        [bhh[:, :2 * TXT_HID], jnp.zeros((1, TXT_HID), f32)], axis=1)
    p["gi_table"] = embedding @ wih + bih + bhh_rz          # (VOCAB, 3H) f32
    p["whh"] = whh.astype(bf16)                             # (H, 3H)

    # ---- actor ---------------------------------------------------------------
    wa1 = _normed_linear(ks[8], 64, IMG_EMB + TXT_HID).astype(bf16)   # (192,64)
    wa1_img, wa1_txt = wa1[:IMG_EMB], wa1[IMG_EMB:]
    wa2 = _normed_linear(ks[9], N_ACTIONS, 64).astype(bf16)           # (64, A)

    # ---- packed bf16 weight blob (one DMA; row offsets multiples of 128) ----
    blob = jnp.zeros((_W_BLOB_ROWS, 128), bf16)
    blob = blob.at[_W1:_W1 + 256, :].set(w1_perm)             # (256,128)
    blob = blob.at[_W2:_W2 + 128, 0:64].set(w2)               # (128, 64)
    blob = blob.at[_W3:_W3 + 64, 0:64].set(w3)                # ( 64, 64)
    blob = blob.at[_WA1I:_WA1I + 64, 0:64].set(wa1_img)       # ( 64, 64)
    blob = blob.at[_WA1T:_WA1T + 128, 0:64].set(wa1_txt)      # (128, 64)
    blob = blob.at[_WA2:_WA2 + 64, 0:N_ACTIONS].set(wa2)      # ( 64,  A)
    p["w_blob"] = blob

    # ---- packed f32 const blob: rows b1,b2,b3,ba1,ba2,bhn (biases are 0) ----
    consts = jnp.zeros((8, 128), f32)
    consts = consts.at[_BHN, :].set(bhh[0, 2 * TXT_HID:])
    p["consts"] = consts

    # ---- raw copies kept only for the pure-JAX reference --------------------
    p["w1_std"], p["w2"], p["w3"] = w1, w2, w3
    p["wa1_img"], p["wa1_txt"], p["wa2"] = wa1_img, wa1_txt, wa2
    p["b1"] = jnp.zeros((1, IMG_FLAT // 2), f32)
    p["b2"] = jnp.zeros((1, IMG_FLAT // 4), f32)
    p["b3"] = jnp.zeros((1, IMG_EMB), f32)
    p["ba1"] = jnp.zeros((1, 64), f32)
    p["ba2"] = jnp.zeros((1, N_ACTIONS), f32)
    p["embedding"], p["wih"], p["bih"], p["bhh"] = embedding, wih, bih, bhh
    return p


# --------------------------- pure-JAX reference -------------------------------
def reference(image, text, p):
    """Original PyTorch forward semantics, with the same bf16-weight /
    f32-accumulate precision policy as the kernel (un-fused, un-permuted)."""
    f32 = jnp.float32

    def bdot(a, b):  # bf16 MXU inputs, f32 accumulation
        return jnp.dot(a.astype(jnp.bfloat16), b, preferred_element_type=f32)

    B = image.shape[0]
    x = jnp.transpose(image, (0, 3, 1, 2)).reshape(B, -1)   # original permute
    h = jax.nn.relu(bdot(x, p["w1_std"]) + p["b1"])
    h = jax.nn.relu(bdot(h, p["w2"]) + p["b2"])
    img = jax.nn.relu(bdot(h, p["w3"]) + p["b3"])

    emb = p["embedding"][text]                              # (B, T, E) f32
    H = TXT_HID
    hT = jnp.zeros((B, H), f32)
    for t in range(emb.shape[1]):
        gi = emb[:, t, :] @ p["wih"] + p["bih"]
        gh = bdot(hT, p["whh"]) + p["bhh"]
        r = jax.nn.sigmoid(gi[:, :H] + gh[:, :H])
        z = jax.nn.sigmoid(gi[:, H:2 * H] + gh[:, H:2 * H])
        n = jnp.tanh(gi[:, 2 * H:] + r * gh[:, 2 * H:])
        hT = (1.0 - z) * n + z * hT

    a1 = jnp.tanh(bdot(img, p["wa1_img"]) + bdot(hT, p["wa1_txt"]) + p["ba1"])
    return bdot(a1, p["wa2"]) + p["ba2"]


if __name__ == "__main__":
    key = jax.random.PRNGKey(0)
    k_param, k_img, k_txt = jax.random.split(key, 3)
    params = make_params(k_param)

    image = jax.random.normal(k_img, (BATCH, IMG_N, IMG_M, IMG_Z), jnp.float32)
    text = jax.random.randint(k_txt, (BATCH, SEQ), 0, VOCAB, jnp.int32)

    out = qmodel_forward(image, text, params)
    out = jax.block_until_ready(out)

    ref = reference(image, text, params)
    assert out.shape == (BATCH, N_ACTIONS)
    assert jnp.allclose(out, ref, rtol=1e-3, atol=1e-3), "mismatch vs JAX reference"

    print("KERNEL_OK")
</pallas_src>

<mosaic_0001>
module attributes {stable_mosaic.version = 11 : i64} {
  func.func @qmodel_kernel(%arg0: memref<2x256xf32, #tpu.memory_space<vmem>>, %arg1: memref<896x128xbf16, #tpu.memory_space<vmem>>, %arg2: memref<128x384xbf16, #tpu.memory_space<vmem>>, %arg3: memref<2x8x384xf32, #tpu.memory_space<vmem>>, %arg4: memref<8x128xf32, #tpu.memory_space<vmem>>, %arg5: memref<2x8xf32, #tpu.memory_space<vmem>>) attributes {dimension_semantics = [], scalar_prefetch = 0 : i64, scratch_operands = 0 : i64, tpu.core_type = #tpu.core_type<tc>} {
    %c0 = arith.constant 0 : index
    %c0_0 = arith.constant 0 : index
    %0 = vector.load %arg0[%c0, %c0_0] : memref<2x256xf32, #tpu.memory_space<vmem>>, vector<2x256xf32>
    %1 = arith.truncf %0 : vector<2x256xf32> to vector<2x256xbf16>
    %c0_1 = arith.constant 0 : index
    %c0_2 = arith.constant 0 : index
    %2 = vector.load %arg1[%c0_1, %c0_2] : memref<896x128xbf16, #tpu.memory_space<vmem>>, vector<256x128xbf16>
    %cst = arith.constant dense<0.000000e+00> : vector<2x128xf32>
    %3 = tpu.matmul %1, %2, %cst {dimension_numbers = #tpu.dot_dimension_numbers<[1], [0], [0], [1], [0, 0, 1, 1], [], []>} : vector<2x256xbf16>, vector<256x128xbf16>, vector<2x128xf32> -> vector<2x128xf32>
    %c0_3 = arith.constant 0 : index
    %c0_4 = arith.constant 0 : index
    %4 = vector.load %arg4[%c0_3, %c0_4] : memref<8x128xf32, #tpu.memory_space<vmem>>, vector<1x128xf32>
    %5 = vector.broadcast %4 : vector<1x128xf32> to vector<2x128xf32>
    %6 = arith.addf %3, %5 : vector<2x128xf32>
    %cst_5 = arith.constant 0.000000e+00 : f32
    %7 = vector.broadcast %cst_5 : f32 to vector<2x128xf32>
    %8 = arith.maximumf %6, %7 : vector<2x128xf32>
    %9 = arith.truncf %8 : vector<2x128xf32> to vector<2x128xbf16>
    %c256 = arith.constant 256 : index
    %c0_6 = arith.constant 0 : index
    %10 = vector.load %arg1[%c256, %c0_6] : memref<896x128xbf16, #tpu.memory_space<vmem>>, vector<128x128xbf16>
    %cst_7 = arith.constant dense<0.000000e+00> : vector<2x128xf32>
    %11 = tpu.matmul %9, %10, %cst_7 {dimension_numbers = #tpu.dot_dimension_numbers<[1], [0], [0], [1], [0, 0, 1, 1], [], []>} : vector<2x128xbf16>, vector<128x128xbf16>, vector<2x128xf32> -> vector<2x128xf32>
    %c1 = arith.constant 1 : index
    %c0_8 = arith.constant 0 : index
    %12 = vector.load %arg4[%c1, %c0_8] : memref<8x128xf32, #tpu.memory_space<vmem>>, vector<1x128xf32>
    %13 = vector.broadcast %12 : vector<1x128xf32> to vector<2x128xf32>
    %14 = arith.addf %11, %13 : vector<2x128xf32>
    %cst_9 = arith.constant 0.000000e+00 : f32
    %15 = vector.broadcast %cst_9 : f32 to vector<2x128xf32>
    %16 = arith.maximumf %14, %15 : vector<2x128xf32>
    %17 = arith.truncf %16 : vector<2x128xf32> to vector<2x128xbf16>
    %c384 = arith.constant 384 : index
    %c0_10 = arith.constant 0 : index
    %18 = vector.load %arg1[%c384, %c0_10] : memref<896x128xbf16, #tpu.memory_space<vmem>>, vector<128x128xbf16>
    %cst_11 = arith.constant dense<0.000000e+00> : vector<2x128xf32>
    %19 = tpu.matmul %17, %18, %cst_11 {dimension_numbers = #tpu.dot_dimension_numbers<[1], [0], [0], [1], [0, 0, 1, 1], [], []>} : vector<2x128xbf16>, vector<128x128xbf16>, vector<2x128xf32> -> vector<2x128xf32>
    %c2 = arith.constant 2 : index
    %c0_12 = arith.constant 0 : index
    %20 = vector.load %arg4[%c2, %c0_12] : memref<8x128xf32, #tpu.memory_space<vmem>>, vector<1x128xf32>
    %21 = vector.broadcast %20 : vector<1x128xf32> to vector<2x128xf32>
    %22 = arith.addf %19, %21 : vector<2x128xf32>
    %cst_13 = arith.constant 0.000000e+00 : f32
    %23 = vector.broadcast %cst_13 : f32 to vector<2x128xf32>
    %24 = arith.maximumf %22, %23 : vector<2x128xf32>
    %c0_14 = arith.constant 0 : index
    %c0_15 = arith.constant 0 : index
    %c0_16 = arith.constant 0 : index
    %25 = vector.load %arg3[%c0_14, %c0_15, %c0_16] : memref<2x8x384xf32, #tpu.memory_space<vmem>>, vector<2x8x384xf32>
    %c0_17 = arith.constant 0 : index
    %c0_18 = arith.constant 0 : index
    %26 = vector.load %arg2[%c0_17, %c0_18] : memref<128x384xbf16, #tpu.memory_space<vmem>>, vector<128x384xbf16>
    %c5 = arith.constant 5 : index
    %c0_19 = arith.constant 0 : index
    %27 = vector.load %arg4[%c5, %c0_19] : memref<8x128xf32, #tpu.memory_space<vmem>>, vector<1x128xf32>
    %28 = vector.shape_cast %27 : vector<1x128xf32> to vector<1x128xf32>
    %29 = vector.broadcast %28 : vector<1x128xf32> to vector<2x128xf32>
    %cst_20 = arith.constant 0.000000e+00 : f32
    %30 = vector.broadcast %cst_20 : f32 to vector<2x128xf32>
    %31 = vector.extract_strided_slice %25 {offsets = [0, 0, 0], sizes = [2, 1, 384], strides = [1, 1, 1]} : vector<2x8x384xf32> to vector<2x1x384xf32>
    %32 = vector.shape_cast %31 : vector<2x1x384xf32> to vector<2x384xf32>
    %33 = arith.truncf %30 : vector<2x128xf32> to vector<2x128xbf16>
    %cst_21 = arith.constant dense<0.000000e+00> : vector<2x384xf32>
    %34 = tpu.matmul %33, %26, %cst_21 {dimension_numbers = #tpu.dot_dimension_numbers<[1], [0], [0], [1], [0, 0, 1, 1], [], []>} : vector<2x128xbf16>, vector<128x384xbf16>, vector<2x384xf32> -> vector<2x384xf32>
    %35 = vector.extract_strided_slice %32 {offsets = [0, 0], sizes = [2, 128], strides = [1, 1]} : vector<2x384xf32> to vector<2x128xf32>
    %36 = vector.extract_strided_slice %34 {offsets = [0, 0], sizes = [2, 128], strides = [1, 1]} : vector<2x384xf32> to vector<2x128xf32>
    %37 = arith.addf %35, %36 : vector<2x128xf32>
    %38 = arith.negf %37 : vector<2x128xf32>
    %39 = math.exp %38 : vector<2x128xf32>
    %cst_22 = arith.constant 1.000000e+00 : f32
    %40 = vector.broadcast %cst_22 : f32 to vector<2x128xf32>
    %41 = arith.addf %40, %39 : vector<2x128xf32>
    %42 = arith.divf %40, %41 : vector<2x128xf32>
    %43 = vector.extract_strided_slice %32 {offsets = [0, 128], sizes = [2, 128], strides = [1, 1]} : vector<2x384xf32> to vector<2x128xf32>
    %44 = vector.extract_strided_slice %34 {offsets = [0, 128], sizes = [2, 128], strides = [1, 1]} : vector<2x384xf32> to vector<2x128xf32>
    %45 = arith.addf %43, %44 : vector<2x128xf32>
    %46 = arith.negf %45 : vector<2x128xf32>
    %47 = math.exp %46 : vector<2x128xf32>
    %cst_23 = arith.constant 1.000000e+00 : f32
    %48 = vector.broadcast %cst_23 : f32 to vector<2x128xf32>
    %49 = arith.addf %48, %47 : vector<2x128xf32>
    %50 = arith.divf %48, %49 : vector<2x128xf32>
    %51 = vector.extract_strided_slice %32 {offsets = [0, 256], sizes = [2, 128], strides = [1, 1]} : vector<2x384xf32> to vector<2x128xf32>
    %52 = vector.extract_strided_slice %34 {offsets = [0, 256], sizes = [2, 128], strides = [1, 1]} : vector<2x384xf32> to vector<2x128xf32>
    %53 = arith.addf %52, %29 : vector<2x128xf32>
    %54 = arith.mulf %42, %53 : vector<2x128xf32>
    %55 = arith.addf %51, %54 : vector<2x128xf32>
    %56 = math.tanh %55 : vector<2x128xf32>
    %cst_24 = arith.constant 1.000000e+00 : f32
    %57 = vector.broadcast %cst_24 : f32 to vector<2x128xf32>
    %58 = arith.subf %57, %50 : vector<2x128xf32>
    %59 = arith.mulf %58, %56 : vector<2x128xf32>
    %60 = arith.mulf %50, %30 : vector<2x128xf32>
    %61 = arith.addf %59, %60 : vector<2x128xf32>
    %62 = vector.extract_strided_slice %25 {offsets = [0, 1, 0], sizes = [2, 1, 384], strides = [1, 1, 1]} : vector<2x8x384xf32> to vector<2x1x384xf32>
    %63 = vector.shape_cast %62 : vector<2x1x384xf32> to vector<2x384xf32>
    %64 = arith.truncf %61 : vector<2x128xf32> to vector<2x128xbf16>
    %cst_25 = arith.constant dense<0.000000e+00> : vector<2x384xf32>
    %65 = tpu.matmul %64, %26, %cst_25 {dimension_numbers = #tpu.dot_dimension_numbers<[1], [0], [0], [1], [0, 0, 1, 1], [], []>} : vector<2x128xbf16>, vector<128x384xbf16>, vector<2x384xf32> -> vector<2x384xf32>
    %66 = vector.extract_strided_slice %63 {offsets = [0, 0], sizes = [2, 128], strides = [1, 1]} : vector<2x384xf32> to vector<2x128xf32>
    %67 = vector.extract_strided_slice %65 {offsets = [0, 0], sizes = [2, 128], strides = [1, 1]} : vector<2x384xf32> to vector<2x128xf32>
    %68 = arith.addf %66, %67 : vector<2x128xf32>
    %69 = arith.negf %68 : vector<2x128xf32>
    %70 = math.exp %69 : vector<2x128xf32>
    %cst_26 = arith.constant 1.000000e+00 : f32
    %71 = vector.broadcast %cst_26 : f32 to vector<2x128xf32>
    %72 = arith.addf %71, %70 : vector<2x128xf32>
    %73 = arith.divf %71, %72 : vector<2x128xf32>
    %74 = vector.extract_strided_slice %63 {offsets = [0, 128], sizes = [2, 128], strides = [1, 1]} : vector<2x384xf32> to vector<2x128xf32>
    %75 = vector.extract_strided_slice %65 {offsets = [0, 128], sizes = [2, 128], strides = [1, 1]} : vector<2x384xf32> to vector<2x128xf32>
    %76 = arith.addf %74, %75 : vector<2x128xf32>
    %77 = arith.negf %76 : vector<2x128xf32>
    %78 = math.exp %77 : vector<2x128xf32>
    %cst_27 = arith.constant 1.000000e+00 : f32
    %79 = vector.broadcast %cst_27 : f32 to vector<2x128xf32>
    %80 = arith.addf %79, %78 : vector<2x128xf32>
    %81 = arith.divf %79, %80 : vector<2x128xf32>
    %82 = vector.extract_strided_slice %63 {offsets = [0, 256], sizes = [2, 128], strides = [1, 1]} : vector<2x384xf32> to vector<2x128xf32>
    %83 = vector.extract_strided_slice %65 {offsets = [0, 256], sizes = [2, 128], strides = [1, 1]} : vector<2x384xf32> to vector<2x128xf32>
    %84 = arith.addf %83, %29 : vector<2x128xf32>
    %85 = arith.mulf %73, %84 : vector<2x128xf32>
    %86 = arith.addf %82, %85 : vector<2x128xf32>
    %87 = math.tanh %86 : vector<2x128xf32>
    %cst_28 = arith.constant 1.000000e+00 : f32
    %88 = vector.broadcast %cst_28 : f32 to vector<2x128xf32>
    %89 = arith.subf %88, %81 : vector<2x128xf32>
    %90 = arith.mulf %89, %87 : vector<2x128xf32>
    %91 = arith.mulf %81, %61 : vector<2x128xf32>
    %92 = arith.addf %90, %91 : vector<2x128xf32>
    %93 = vector.extract_strided_slice %25 {offsets = [0, 2, 0], sizes = [2, 1, 384], strides = [1, 1, 1]} : vector<2x8x384xf32> to vector<2x1x384xf32>
    %94 = vector.shape_cast %93 : vector<2x1x384xf32> to vector<2x384xf32>
    %95 = arith.truncf %92 : vector<2x128xf32> to vector<2x128xbf16>
    %cst_29 = arith.constant dense<0.000000e+00> : vector<2x384xf32>
    %96 = tpu.matmul %95, %26, %cst_29 {dimension_numbers = #tpu.dot_dimension_numbers<[1], [0], [0], [1], [0, 0, 1, 1], [], []>} : vector<2x128xbf16>, vector<128x384xbf16>, vector<2x384xf32> -> vector<2x384xf32>
    %97 = vector.extract_strided_slice %94 {offsets = [0, 0], sizes = [2, 128], strides = [1, 1]} : vector<2x384xf32> to vector<2x128xf32>
    %98 = vector.extract_strided_slice %96 {offsets = [0, 0], sizes = [2, 128], strides = [1, 1]} : vector<2x384xf32> to vector<2x128xf32>
    %99 = arith.addf %97, %98 : vector<2x128xf32>
    %100 = arith.negf %99 : vector<2x128xf32>
    %101 = math.exp %100 : vector<2x128xf32>
    %cst_30 = arith.constant 1.000000e+00 : f32
    %102 = vector.broadcast %cst_30 : f32 to vector<2x128xf32>
    %103 = arith.addf %102, %101 : vector<2x128xf32>
    %104 = arith.divf %102, %103 : vector<2x128xf32>
    %105 = vector.extract_strided_slice %94 {offsets = [0, 128], sizes = [2, 128], strides = [1, 1]} : vector<2x384xf32> to vector<2x128xf32>
    %106 = vector.extract_strided_slice %96 {offsets = [0, 128], sizes = [2, 128], strides = [1, 1]} : vector<2x384xf32> to vector<2x128xf32>
    %107 = arith.addf %105, %106 : vector<2x128xf32>
    %108 = arith.negf %107 : vector<2x128xf32>
    %109 = math.exp %108 : vector<2x128xf32>
    %cst_31 = arith.constant 1.000000e+00 : f32
    %110 = vector.broadcast %cst_31 : f32 to vector<2x128xf32>
    %111 = arith.addf %110, %109 : vector<2x128xf32>
    %112 = arith.divf %110, %111 : vector<2x128xf32>
    %113 = vector.extract_strided_slice %94 {offsets = [0, 256], sizes = [2, 128], strides = [1, 1]} : vector<2x384xf32> to vector<2x128xf32>
    %114 = vector.extract_strided_slice %96 {offsets = [0, 256], sizes = [2, 128], strides = [1, 1]} : vector<2x384xf32> to vector<2x128xf32>
    %115 = arith.addf %114, %29 : vector<2x128xf32>
    %116 = arith.mulf %104, %115 : vector<2x128xf32>
    %117 = arith.addf %113, %116 : vector<2x128xf32>
    %118 = math.tanh %117 : vector<2x128xf32>
    %cst_32 = arith.constant 1.000000e+00 : f32
    %119 = vector.broadcast %cst_32 : f32 to vector<2x128xf32>
    %120 = arith.subf %119, %112 : vector<2x128xf32>
    %121 = arith.mulf %120, %118 : vector<2x128xf32>
    %122 = arith.mulf %112, %92 : vector<2x128xf32>
    %123 = arith.addf %121, %122 : vector<2x128xf32>
    %124 = vector.extract_strided_slice %25 {offsets = [0, 3, 0], sizes = [2, 1, 384], strides = [1, 1, 1]} : vector<2x8x384xf32> to vector<2x1x384xf32>
    %125 = vector.shape_cast %124 : vector<2x1x384xf32> to vector<2x384xf32>
    %126 = arith.truncf %123 : vector<2x128xf32> to vector<2x128xbf16>
    %cst_33 = arith.constant dense<0.000000e+00> : vector<2x384xf32>
    %127 = tpu.matmul %126, %26, %cst_33 {dimension_numbers = #tpu.dot_dimension_numbers<[1], [0], [0], [1], [0, 0, 1, 1], [], []>} : vector<2x128xbf16>, vector<128x384xbf16>, vector<2x384xf32> -> vector<2x384xf32>
    %128 = vector.extract_strided_slice %125 {offsets = [0, 0], sizes = [2, 128], strides = [1, 1]} : vector<2x384xf32> to vector<2x128xf32>
    %129 = vector.extract_strided_slice %127 {offsets = [0, 0], sizes = [2, 128], strides = [1, 1]} : vector<2x384xf32> to vector<2x128xf32>
    %130 = arith.addf %128, %129 : vector<2x128xf32>
    %131 = arith.negf %130 : vector<2x128xf32>
    %132 = math.exp %131 : vector<2x128xf32>
    %cst_34 = arith.constant 1.000000e+00 : f32
    %133 = vector.broadcast %cst_34 : f32 to vector<2x128xf32>
    %134 = arith.addf %133, %132 : vector<2x128xf32>
    %135 = arith.divf %133, %134 : vector<2x128xf32>
    %136 = vector.extract_strided_slice %125 {offsets = [0, 128], sizes = [2, 128], strides = [1, 1]} : vector<2x384xf32> to vector<2x128xf32>
    %137 = vector.extract_strided_slice %127 {offsets = [0, 128], sizes = [2, 128], strides = [1, 1]} : vector<2x384xf32> to vector<2x128xf32>
    %138 = arith.addf %136, %137 : vector<2x128xf32>
    %139 = arith.negf %138 : vector<2x128xf32>
    %140 = math.exp %139 : vector<2x128xf32>
    %cst_35 = arith.constant 1.000000e+00 : f32
    %141 = vector.broadcast %cst_35 : f32 to vector<2x128xf32>
    %142 = arith.addf %141, %140 : vector<2x128xf32>
    %143 = arith.divf %141, %142 : vector<2x128xf32>
    %144 = vector.extract_strided_slice %125 {offsets = [0, 256], sizes = [2, 128], strides = [1, 1]} : vector<2x384xf32> to vector<2x128xf32>
    %145 = vector.extract_strided_slice %127 {offsets = [0, 256], sizes = [2, 128], strides = [1, 1]} : vector<2x384xf32> to vector<2x128xf32>
    %146 = arith.addf %145, %29 : vector<2x128xf32>
    %147 = arith.mulf %135, %146 : vector<2x128xf32>
    %148 = arith.addf %144, %147 : vector<2x128xf32>
    %149 = math.tanh %148 : vector<2x128xf32>
    %cst_36 = arith.constant 1.000000e+00 : f32
    %150 = vector.broadcast %cst_36 : f32 to vector<2x128xf32>
    %151 = arith.subf %150, %143 : vector<2x128xf32>
    %152 = arith.mulf %151, %149 : vector<2x128xf32>
    %153 = arith.mulf %143, %123 : vector<2x128xf32>
    %154 = arith.addf %152, %153 : vector<2x128xf32>
    %155 = vector.extract_strided_slice %25 {offsets = [0, 4, 0], sizes = [2, 1, 384], strides = [1, 1, 1]} : vector<2x8x384xf32> to vector<2x1x384xf32>
    %156 = vector.shape_cast %155 : vector<2x1x384xf32> to vector<2x384xf32>
    %157 = arith.truncf %154 : vector<2x128xf32> to vector<2x128xbf16>
    %cst_37 = arith.constant dense<0.000000e+00> : vector<2x384xf32>
    %158 = tpu.matmul %157, %26, %cst_37 {dimension_numbers = #tpu.dot_dimension_numbers<[1], [0], [0], [1], [0, 0, 1, 1], [], []>} : vector<2x128xbf16>, vector<128x384xbf16>, vector<2x384xf32> -> vector<2x384xf32>
    %159 = vector.extract_strided_slice %156 {offsets = [0, 0], sizes = [2, 128], strides = [1, 1]} : vector<2x384xf32> to vector<2x128xf32>
    %160 = vector.extract_strided_slice %158 {offsets = [0, 0], sizes = [2, 128], strides = [1, 1]} : vector<2x384xf32> to vector<2x128xf32>
    %161 = arith.addf %159, %160 : vector<2x128xf32>
    %162 = arith.negf %161 : vector<2x128xf32>
    %163 = math.exp %162 : vector<2x128xf32>
    %cst_38 = arith.constant 1.000000e+00 : f32
    %164 = vector.broadcast %cst_38 : f32 to vector<2x128xf32>
    %165 = arith.addf %164, %163 : vector<2x128xf32>
    %166 = arith.divf %164, %165 : vector<2x128xf32>
    %167 = vector.extract_strided_slice %156 {offsets = [0, 128], sizes = [2, 128], strides = [1, 1]} : vector<2x384xf32> to vector<2x128xf32>
    %168 = vector.extract_strided_slice %158 {offsets = [0, 128], sizes = [2, 128], strides = [1, 1]} : vector<2x384xf32> to vector<2x128xf32>
    %169 = arith.addf %167, %168 : vector<2x128xf32>
    %170 = arith.negf %169 : vector<2x128xf32>
    %171 = math.exp %170 : vector<2x128xf32>
    %cst_39 = arith.constant 1.000000e+00 : f32
    %172 = vector.broadcast %cst_39 : f32 to vector<2x128xf32>
    %173 = arith.addf %172, %171 : vector<2x128xf32>
    %174 = arith.divf %172, %173 : vector<2x128xf32>
    %175 = vector.extract_strided_slice %156 {offsets = [0, 256], sizes = [2, 128], strides = [1, 1]} : vector<2x384xf32> to vector<2x128xf32>
    %176 = vector.extract_strided_slice %158 {offsets = [0, 256], sizes = [2, 128], strides = [1, 1]} : vector<2x384xf32> to vector<2x128xf32>
    %177 = arith.addf %176, %29 : vector<2x128xf32>
    %178 = arith.mulf %166, %177 : vector<2x128xf32>
    %179 = arith.addf %175, %178 : vector<2x128xf32>
    %180 = math.tanh %179 : vector<2x128xf32>
    %cst_40 = arith.constant 1.000000e+00 : f32
    %181 = vector.broadcast %cst_40 : f32 to vector<2x128xf32>
    %182 = arith.subf %181, %174 : vector<2x128xf32>
    %183 = arith.mulf %182, %180 : vector<2x128xf32>
    %184 = arith.mulf %174, %154 : vector<2x128xf32>
    %185 = arith.addf %183, %184 : vector<2x128xf32>
    %186 = vector.extract_strided_slice %25 {offsets = [0, 5, 0], sizes = [2, 1, 384], strides = [1, 1, 1]} : vector<2x8x384xf32> to vector<2x1x384xf32>
    %187 = vector.shape_cast %186 : vector<2x1x384xf32> to vector<2x384xf32>
    %188 = arith.truncf %185 : vector<2x128xf32> to vector<2x128xbf16>
    %cst_41 = arith.constant dense<0.000000e+00> : vector<2x384xf32>
    %189 = tpu.matmul %188, %26, %cst_41 {dimension_numbers = #tpu.dot_dimension_numbers<[1], [0], [0], [1], [0, 0, 1, 1], [], []>} : vector<2x128xbf16>, vector<128x384xbf16>, vector<2x384xf32> -> vector<2x384xf32>
    %190 = vector.extract_strided_slice %187 {offsets = [0, 0], sizes = [2, 128], strides = [1, 1]} : vector<2x384xf32> to vector<2x128xf32>
    %191 = vector.extract_strided_slice %189 {offsets = [0, 0], sizes = [2, 128], strides = [1, 1]} : vector<2x384xf32> to vector<2x128xf32>
    %192 = arith.addf %190, %191 : vector<2x128xf32>
    %193 = arith.negf %192 : vector<2x128xf32>
    %194 = math.exp %193 : vector<2x128xf32>
    %cst_42 = arith.constant 1.000000e+00 : f32
    %195 = vector.broadcast %cst_42 : f32 to vector<2x128xf32>
    %196 = arith.addf %195, %194 : vector<2x128xf32>
    %197 = arith.divf %195, %196 : vector<2x128xf32>
    %198 = vector.extract_strided_slice %187 {offsets = [0, 128], sizes = [2, 128], strides = [1, 1]} : vector<2x384xf32> to vector<2x128xf32>
    %199 = vector.extract_strided_slice %189 {offsets = [0, 128], sizes = [2, 128], strides = [1, 1]} : vector<2x384xf32> to vector<2x128xf32>
    %200 = arith.addf %198, %199 : vector<2x128xf32>
    %201 = arith.negf %200 : vector<2x128xf32>
    %202 = math.exp %201 : vector<2x128xf32>
    %cst_43 = arith.constant 1.000000e+00 : f32
    %203 = vector.broadcast %cst_43 : f32 to vector<2x128xf32>
    %204 = arith.addf %203, %202 : vector<2x128xf32>
    %205 = arith.divf %203, %204 : vector<2x128xf32>
    %206 = vector.extract_strided_slice %187 {offsets = [0, 256], sizes = [2, 128], strides = [1, 1]} : vector<2x384xf32> to vector<2x128xf32>
    %207 = vector.extract_strided_slice %189 {offsets = [0, 256], sizes = [2, 128], strides = [1, 1]} : vector<2x384xf32> to vector<2x128xf32>
    %208 = arith.addf %207, %29 : vector<2x128xf32>
    %209 = arith.mulf %197, %208 : vector<2x128xf32>
    %210 = arith.addf %206, %209 : vector<2x128xf32>
    %211 = math.tanh %210 : vector<2x128xf32>
    %cst_44 = arith.constant 1.000000e+00 : f32
    %212 = vector.broadcast %cst_44 : f32 to vector<2x128xf32>
    %213 = arith.subf %212, %205 : vector<2x128xf32>
    %214 = arith.mulf %213, %211 : vector<2x128xf32>
    %215 = arith.mulf %205, %185 : vector<2x128xf32>
    %216 = arith.addf %214, %215 : vector<2x128xf32>
    %217 = vector.extract_strided_slice %25 {offsets = [0, 6, 0], sizes = [2, 1, 384], strides = [1, 1, 1]} : vector<2x8x384xf32> to vector<2x1x384xf32>
    %218 = vector.shape_cast %217 : vector<2x1x384xf32> to vector<2x384xf32>
    %219 = arith.truncf %216 : vector<2x128xf32> to vector<2x128xbf16>
    %cst_45 = arith.constant dense<0.000000e+00> : vector<2x384xf32>
    %220 = tpu.matmul %219, %26, %cst_45 {dimension_numbers = #tpu.dot_dimension_numbers<[1], [0], [0], [1], [0, 0, 1, 1], [], []>} : vector<2x128xbf16>, vector<128x384xbf16>, vector<2x384xf32> -> vector<2x384xf32>
    %221 = vector.extract_strided_slice %218 {offsets = [0, 0], sizes = [2, 128], strides = [1, 1]} : vector<2x384xf32> to vector<2x128xf32>
    %222 = vector.extract_strided_slice %220 {offsets = [0, 0], sizes = [2, 128], strides = [1, 1]} : vector<2x384xf32> to vector<2x128xf32>
    %223 = arith.addf %221, %222 : vector<2x128xf32>
    %224 = arith.negf %223 : vector<2x128xf32>
    %225 = math.exp %224 : vector<2x128xf32>
    %cst_46 = arith.constant 1.000000e+00 : f32
    %226 = vector.broadcast %cst_46 : f32 to vector<2x128xf32>
    %227 = arith.addf %226, %225 : vector<2x128xf32>
    %228 = arith.divf %226, %227 : vector<2x128xf32>
    %229 = vector.extract_strided_slice %218 {offsets = [0, 128], sizes = [2, 128], strides = [1, 1]} : vector<2x384xf32> to vector<2x128xf32>
    %230 = vector.extract_strided_slice %220 {offsets = [0, 128], sizes = [2, 128], strides = [1, 1]} : vector<2x384xf32> to vector<2x128xf32>
    %231 = arith.addf %229, %230 : vector<2x128xf32>
    %232 = arith.negf %231 : vector<2x128xf32>
    %233 = math.exp %232 : vector<2x128xf32>
    %cst_47 = arith.constant 1.000000e+00 : f32
    %234 = vector.broadcast %cst_47 : f32 to vector<2x128xf32>
    %235 = arith.addf %234, %233 : vector<2x128xf32>
    %236 = arith.divf %234, %235 : vector<2x128xf32>
    %237 = vector.extract_strided_slice %218 {offsets = [0, 256], sizes = [2, 128], strides = [1, 1]} : vector<2x384xf32> to vector<2x128xf32>
    %238 = vector.extract_strided_slice %220 {offsets = [0, 256], sizes = [2, 128], strides = [1, 1]} : vector<2x384xf32> to vector<2x128xf32>
    %239 = arith.addf %238, %29 : vector<2x128xf32>
    %240 = arith.mulf %228, %239 : vector<2x128xf32>
    %241 = arith.addf %237, %240 : vector<2x128xf32>
    %242 = math.tanh %241 : vector<2x128xf32>
    %cst_48 = arith.constant 1.000000e+00 : f32
    %243 = vector.broadcast %cst_48 : f32 to vector<2x128xf32>
    %244 = arith.subf %243, %236 : vector<2x128xf32>
    %245 = arith.mulf %244, %242 : vector<2x128xf32>
    %246 = arith.mulf %236, %216 : vector<2x128xf32>
    %247 = arith.addf %245, %246 : vector<2x128xf32>
    %248 = vector.extract_strided_slice %25 {offsets = [0, 7, 0], sizes = [2, 1, 384], strides = [1, 1, 1]} : vector<2x8x384xf32> to vector<2x1x384xf32>
    %249 = vector.shape_cast %248 : vector<2x1x384xf32> to vector<2x384xf32>
    %250 = arith.truncf %247 : vector<2x128xf32> to vector<2x128xbf16>
    %cst_49 = arith.constant dense<0.000000e+00> : vector<2x384xf32>
    %251 = tpu.matmul %250, %26, %cst_49 {dimension_numbers = #tpu.dot_dimension_numbers<[1], [0], [0], [1], [0, 0, 1, 1], [], []>} : vector<2x128xbf16>, vector<128x384xbf16>, vector<2x384xf32> -> vector<2x384xf32>
    %252 = vector.extract_strided_slice %249 {offsets = [0, 0], sizes = [2, 128], strides = [1, 1]} : vector<2x384xf32> to vector<2x128xf32>
    %253 = vector.extract_strided_slice %251 {offsets = [0, 0], sizes = [2, 128], strides = [1, 1]} : vector<2x384xf32> to vector<2x128xf32>
    %254 = arith.addf %252, %253 : vector<2x128xf32>
    %255 = arith.negf %254 : vector<2x128xf32>
    %256 = math.exp %255 : vector<2x128xf32>
    %cst_50 = arith.constant 1.000000e+00 : f32
    %257 = vector.broadcast %cst_50 : f32 to vector<2x128xf32>
    %258 = arith.addf %257, %256 : vector<2x128xf32>
    %259 = arith.divf %257, %258 : vector<2x128xf32>
    %260 = vector.extract_strided_slice %249 {offsets = [0, 128], sizes = [2, 128], strides = [1, 1]} : vector<2x384xf32> to vector<2x128xf32>
    %261 = vector.extract_strided_slice %251 {offsets = [0, 128], sizes = [2, 128], strides = [1, 1]} : vector<2x384xf32> to vector<2x128xf32>
    %262 = arith.addf %260, %261 : vector<2x128xf32>
    %263 = arith.negf %262 : vector<2x128xf32>
    %264 = math.exp %263 : vector<2x128xf32>
    %cst_51 = arith.constant 1.000000e+00 : f32
    %265 = vector.broadcast %cst_51 : f32 to vector<2x128xf32>
    %266 = arith.addf %265, %264 : vector<2x128xf32>
    %267 = arith.divf %265, %266 : vector<2x128xf32>
    %268 = vector.extract_strided_slice %249 {offsets = [0, 256], sizes = [2, 128], strides = [1, 1]} : vector<2x384xf32> to vector<2x128xf32>
    %269 = vector.extract_strided_slice %251 {offsets = [0, 256], sizes = [2, 128], strides = [1, 1]} : vector<2x384xf32> to vector<2x128xf32>
    %270 = arith.addf %269, %29 : vector<2x128xf32>
    %271 = arith.mulf %259, %270 : vector<2x128xf32>
    %272 = arith.addf %268, %271 : vector<2x128xf32>
    %273 = math.tanh %272 : vector<2x128xf32>
    %cst_52 = arith.constant 1.000000e+00 : f32
    %274 = vector.broadcast %cst_52 : f32 to vector<2x128xf32>
    %275 = arith.subf %274, %267 : vector<2x128xf32>
    %276 = arith.mulf %275, %273 : vector<2x128xf32>
    %277 = arith.mulf %267, %247 : vector<2x128xf32>
    %278 = arith.addf %276, %277 : vector<2x128xf32>
    %279 = arith.truncf %24 : vector<2x128xf32> to vector<2x128xbf16>
    %c512 = arith.constant 512 : index
    %c0_53 = arith.constant 0 : index
    %280 = vector.load %arg1[%c512, %c0_53] : memref<896x128xbf16, #tpu.memory_space<vmem>>, vector<128x128xbf16>
    %cst_54 = arith.constant dense<0.000000e+00> : vector<2x128xf32>
    %281 = tpu.matmul %279, %280, %cst_54 {dimension_numbers = #tpu.dot_dimension_numbers<[1], [0], [0], [1], [0, 0, 1, 1], [], []>} : vector<2x128xbf16>, vector<128x128xbf16>, vector<2x128xf32> -> vector<2x128xf32>
    %282 = arith.truncf %278 : vector<2x128xf32> to vector<2x128xbf16>
    %c640 = arith.constant 640 : index
    %c0_55 = arith.constant 0 : index
    %283 = vector.load %arg1[%c640, %c0_55] : memref<896x128xbf16, #tpu.memory_space<vmem>>, vector<128x128xbf16>
    %cst_56 = arith.constant dense<0.000000e+00> : vector<2x128xf32>
    %284 = tpu.matmul %282, %283, %cst_56 {dimension_numbers = #tpu.dot_dimension_numbers<[1], [0], [0], [1], [0, 0, 1, 1], [], []>} : vector<2x128xbf16>, vector<128x128xbf16>, vector<2x128xf32> -> vector<2x128xf32>
    %285 = arith.addf %281, %284 : vector<2x128xf32>
    %c3 = arith.constant 3 : index
    %c0_57 = arith.constant 0 : index
    %286 = vector.load %arg4[%c3, %c0_57] : memref<8x128xf32, #tpu.memory_space<vmem>>, vector<1x128xf32>
    %287 = vector.broadcast %286 : vector<1x128xf32> to vector<2x128xf32>
    %288 = arith.addf %285, %287 : vector<2x128xf32>
    %289 = math.tanh %288 : vector<2x128xf32>
    %290 = arith.truncf %289 : vector<2x128xf32> to vector<2x128xbf16>
    %c768 = arith.constant 768 : index
    %c0_58 = arith.constant 0 : index
    %291 = vector.load %arg1[%c768, %c0_58] : memref<896x128xbf16, #tpu.memory_space<vmem>>, vector<128x128xbf16>
    %cst_59 = arith.constant dense<0.000000e+00> : vector<2x128xf32>
    %292 = tpu.matmul %290, %291, %cst_59 {dimension_numbers = #tpu.dot_dimension_numbers<[1], [0], [0], [1], [0, 0, 1, 1], [], []>} : vector<2x128xbf16>, vector<128x128xbf16>, vector<2x128xf32> -> vector<2x128xf32>
    %c4 = arith.constant 4 : index
    %c0_60 = arith.constant 0 : index
    %293 = vector.load %arg4[%c4, %c0_60] : memref<8x128xf32, #tpu.memory_space<vmem>>, vector<1x128xf32>
    %294 = vector.broadcast %293 : vector<1x128xf32> to vector<2x128xf32>
    %295 = arith.addf %292, %294 : vector<2x128xf32>
    %296 = vector.extract_strided_slice %295 {offsets = [0, 0], sizes = [2, 8], strides = [1, 1]} : vector<2x128xf32> to vector<2x8xf32>
    %c0_61 = arith.constant 0 : index
    %c0_62 = arith.constant 0 : index
    %297 = vector.load %arg5[%c0_61, %c0_62] : memref<2x8xf32, #tpu.memory_space<vmem>>, vector<2x8xf32>
    tpu.vector_store %arg5[%c0_61, %c0_62], %296 {strides = array<i32>} : memref<2x8xf32, #tpu.memory_space<vmem>>, vector<2x8xf32>,
    return
  }
}

</mosaic_0001>

<bundles_post_ra>
// kernel: _qmodel_forward.1
= control target key start
LH: loop header
LB: loop body
LE: loop exit
PB: predicated region body
PF: predicated region fallthrough
CT: control target
= control target key end

     0   :  { %v3007_v2 = vmov 0.0   ;;  %s4018_s0 = inlined_call_operand.vmem [shape: f32[2,256], index: 0, kind: input, shape index: {}]   ;;  %s4019_s1 = inlined_call_operand.vmem [shape: bf16[896,128], index: 1, kind: input, shape index: {}]   ;;  %s4020_s2 = inlined_call_operand.vmem [shape: bf16[128,384], index: 2, kind: input, shape index: {}]   ;;  %s4021_s3 = inlined_call_operand.vmem [shape: f32[2,8,384], index: 3, kind: input, shape index: {}]   ;;  %s4022_s4 = inlined_call_operand.vmem [shape: f32[8,128], index: 4, kind: input, shape index: {}]   ;;  %s4023_s5 = inlined_call_operand.hbm [shape: f32[2,8], index: 5, kind: output, shape index: {}]  }
   0x1   :  { %v2702_v0 = vld [vmem:[%s4019_s1 + $0x40] sm:$0xff]   ;;  %2438 = vmatprep.subr.bf16.mxu1 %v3007_v2  ;;  %v2704_v3 = vld [vmem:[%s4019_s1 + $0x48] sm:$0xff]   ;;  %v2706_v5 = vld [vmem:[%s4019_s1 + $0x50] sm:$0xff]  }
   0x2   :  { %v2703_v1 = vld [vmem:[%s4019_s1] sm:$0xff]   ;;  %2299 = vmatprep.subr.bf16.mxu0 %v2702_v0  ;;  %v2705_v4 = vld [vmem:[%s4019_s1 + $0x8] sm:$0xff]   ;;  %v2707_v6 = vld [vmem:[%s4019_s1 + $0x10] sm:$0xff]  }
   0x3   :  { %2300 = vmatpush3.bf16.msra.mxu0 %v2703_v1  ;;  %v2708_v7 = vld [vmem:[%s4019_s1 + $0x58] sm:$0xff]   ;;  %v2710_v9 = vld [vmem:[%s4019_s1 + $0x60] sm:$0xff]   ;;  %v2712_v11 = vld [vmem:[%s4019_s1 + $0x68] sm:$0xff]  }
   0x4   :  { %2301 = vmatprep.subr.bf16.mxu0 %v2704_v3  ;;  %v2709_v8 = vld [vmem:[%s4019_s1 + $0x18] sm:$0xff]   ;;  %v2711_v10 = vld [vmem:[%s4019_s1 + $0x20] sm:$0xff]   ;;  %v2713_v15 = vld [vmem:[%s4019_s1 + $0x28] sm:$0xff]  }
   0x5   :  { %v2180_v12 = vld.sshfl [vmem:[%s4018_s0] sm:$0x33 pattern:$0x76325410]  ;;  %v2719_v17 = vld [vmem:[%s4019_s1 + $0x88] sm:$0xff]   ;;  %v2714_v18 = vld [vmem:[%s4019_s1 + $0x70] sm:$0xff]  }
   0x6   :  { %v31_v13 = vcombine.high %v2180_v12, %v2180_v12  ;;  %v2718_v14 = vld [vmem:[%s4019_s1 + $0x80] sm:$0xff]   ;;  %v2715_v19 = vld [vmem:[%s4019_s1 + $0x30] sm:$0xff]   ;;  %v2716_v20 = vld [vmem:[%s4019_s1 + $0x78] sm:$0xff]   ;;  %v34_v25 = vpack.c.bf16 %v2180_v12, %v2180_v12 }
   0x7   :  { %2302 = vmatpush3.bf16.msra.mxu0 %v2705_v4  ;;  %2439 = vmatpush3.bf16.msra.mxu1 %v2718_v14  ;;  %v2720_v21 = vld [vmem:[%s4019_s1 + $0x90] sm:$0xff]   ;;  %v2717_v22 = vld [vmem:[%s4019_s1 + $0x38] sm:$0xff]   ;;  %v2722_v24 = vld [vmem:[%s4019_s1 + $0xa0] sm:$0xff]  }
   0x8   :  { %2303 = vmatprep.subr.bf16.mxu0 %v2706_v5  ;;  %v35_v16 = vpack.c.bf16 %v31_v13, %v31_v13  ;;  %2440 = vmatprep.subr.bf16.mxu1 %v3007_v2  ;;  %v2721_v23 = vld [vmem:[%s4019_s1 + $0x98] sm:$0xff]   ;;  %v2723_v26 = vld [vmem:[%s4019_s1 + $0xa8] sm:$0xff]  }
   0xa   :  { %201 = vmatprep.mubr.bf16.mxu0 %v35_v16 }
   0xb   :  { %2304 = vmatpush3.bf16.msra.mxu0 %v2707_v6  ;;  %2441 = vmatpush3.bf16.msra.mxu1 %v2719_v17 }
   0xc   :  { %2305 = vmatprep.subr.bf16.mxu0 %v2708_v7  ;;  %2442 = vmatprep.subr.bf16.mxu1 %v3007_v2 }
   0xf   :  { %2306 = vmatpush3.bf16.msra.mxu0 %v2709_v8  ;;  %2443 = vmatpush3.bf16.msra.mxu1 %v2720_v21 }
  0x10   :  { %2307 = vmatprep.subr.bf16.mxu0 %v2710_v9  ;;  %2444 = vmatprep.subr.bf16.mxu1 %v3007_v2 }
  0x13   :  { %2308 = vmatpush3.bf16.msra.mxu0 %v2711_v10  ;;  %2445 = vmatpush3.bf16.msra.mxu1 %v2721_v23 }
  0x14   :  { %2309 = vmatprep.subr.bf16.mxu0 %v2712_v11  ;;  %2446 = vmatprep.subr.bf16.mxu1 %v3007_v2 }
  0x17   :  { %2310 = vmatpush3.bf16.msra.mxu0 %v2713_v15  ;;  %2447 = vmatpush3.bf16.msra.mxu1 %v2722_v24 }
  0x18   :  { %2311 = vmatprep.subr.bf16.mxu0 %v2714_v18  ;;  %2448 = vmatprep.subr.bf16.mxu1 %v3007_v2 }
  0x1b   :  { %2312 = vmatpush3.bf16.msra.mxu0 %v2715_v19  ;;  %2449 = vmatpush3.bf16.msra.mxu1 %v2723_v26 }
  0x1c   :  { %2313 = vmatprep.subr.bf16.mxu0 %v2716_v20  ;;  %2450 = vmatprep.subr.bf16.mxu1 %v3007_v2 }
  0x1f   :  { %2314 = vmatpush3.bf16.msra.mxu0 %v2717_v22 }
  0x20   :  { %2458 = vmatprep.subr.bf16.mxu0 %v3007_v2 }
  0x22   :  { %202 = vmatmul.mubr.bf16.vlgmr.msra.gmra.mrb[0].mxu0 %v34_v25 }
  0x23   :  { %10 = vsyncpa [#allocation3], 0  ;;  %v2724_v27 = vld [vmem:[%s4019_s1 + $0xb0] sm:$0xff]   ;;  %v2725_v28 = vld [vmem:[%s4019_s1 + $0xb8] sm:$0xff]   ;;  %vm3008_vm0 = vmmov 0   ;;  %v3009_v62 = vmov 0  }
  0x24   :  { %2451 = vmatpush3.bf16.msra.mxu1 %v2724_v27  ;;  %2454 = vmatprep.mubr.msk.bf16.mxu1 %vm3008_vm0, %v3007_v2  ;;  %v2726_v29 = vld [vmem:[%s4019_s1 + $0xc0] sm:$0xff]   ;;  %v2730_v31 = vld [vmem:[%s4019_s1 + $0xc8] sm:$0xff]   ;;  %v2734_v32 = vld [vmem:[%s4019_s1 + $0xd0] sm:$0xff]   ;;  %vm746_vm1 = vcmask 1041409   ;;  %vm2164_vm2 = vcmask 58368  }
  0x25   :  { %2452 = vmatprep.subr.bf16.mxu1 %v3007_v2  ;;  %2474 = vmatprep.mubr.msk.bf16.mxu0 %vm3008_vm0, %v3007_v2  ;;  %v3135_v30 = vld [vmem:[%s4020_s2 + $0x4] ss:$12 sps:$4 sm:$0xff]   ;;  %v2738_v33 = vld [vmem:[%s4019_s1 + $0xd8] sm:$0xff]   ;;  %v2746_v35 = vld [vmem:[%s4019_s1 + $0xe8] sm:$0xff]  }
  0x26   :  { %2459 = vmatpush3.bf16.msra.mxu0 %v2726_v29  ;;  %v2742_v34 = vld [vmem:[%s4019_s1 + $0xe0] sm:$0xff]   ;;  %v2750_v36 = vld [vmem:[%s4019_s1 + $0xf0] sm:$0xff]   ;;  %v3174_v47 = vld [vmem:[%s4020_s2 + $0x1c] ss:$12 sps:$4 sm:$0xff]  }
  0x27   :  { %2460 = vmatprep.subr.bf16.mxu0 %v3007_v2  ;;  %v2181_v38 = vld [vmem:[%s4022_s4] ss:$0 sm:$0xff]  ;;  %v3180_v48 = vld [vmem:[%s4020_s2 + $0x18] ss:$12 sps:$4 sm:$0xff]   ;;  %v3192_v50 = vld [vmem:[%s4020_s2 + $0x30] ss:$12 sps:$4 sm:$0xff]  }
  0x28   :  { %2453 = vmatpush3.bf16.msra.mxu1 %v2725_v28  ;;  %v3169_v45 = vld [vmem:[%s4020_s2] ss:$12 sps:$4 sm:$0xff]   ;;  %v3204_v52 = vld [vmem:[%s4020_s2 + $0x48] ss:$12 sps:$4 sm:$0xff]   ;;  %v3210_v53 = vld [vmem:[%s4020_s2 + $0x64] ss:$12 sps:$4 sm:$0xff]  }
  0x29   :  { %603 = vmatprep.subr.bf16.mxu1 %v3135_v30  ;;  %v3186_v49 = vld [vmem:[%s4020_s2 + $0x34] ss:$12 sps:$4 sm:$0xff]   ;;  %v3198_v51 = vld [vmem:[%s4020_s2 + $0x4c] ss:$12 sps:$4 sm:$0xff]   ;;  %v3222_v55 = vld [vmem:[%s4020_s2 + $0x7c] ss:$12 sps:$4 sm:$0xff]  }
  0x2a   :  { %2461 = vmatpush3.bf16.msra.mxu0 %v2730_v31  ;;  %v3216_v54 = vld [vmem:[%s4020_s2 + $0x60] ss:$12 sps:$4 sm:$0xff]   ;;  %v3228_v56 = vld [vmem:[%s4020_s2 + $0x78] ss:$12 sps:$4 sm:$0xff]   ;;  %v3240_v58 = vld [vmem:[%s4020_s2 + $0x90] ss:$12 sps:$4 sm:$0xff]  }
  0x2b   :  { %2462 = vmatprep.subr.bf16.mxu0 %v3007_v2  ;;  %v3235_v57 = vld [vmem:[%s4020_s2 + $0x94] ss:$12 sps:$4 sm:$0xff]   ;;  %v2754_v59 = vld [vmem:[%s4019_s1 + $0xf8] sm:$0xff]  }
  0x2c   :  { %v3250_v60 = vld [vmem:[%s4020_s2 + $0xac] ss:$12 sps:$4 sm:$0xff]   ;;  %v3255_v61 = vld [vmem:[%s4020_s2 + $0xa8] ss:$12 sps:$4 sm:$0xff]   ;;  %v2198_v63 = vld [vmem:[%s4022_s4 + $0x1] ss:$0 sm:$0xff] }
  0x2d   :  { %v3286_v7 = vld [vmem:[%s4020_s2 + $0x8] ss:$12 sps:$4 sm:$0xff]   ;;  %v3292_v9 = vld [vmem:[%s4020_s2 + $0x20] ss:$12 sps:$4 sm:$0xff]   ;;  %v3301_v10 = vld [vmem:[%s4020_s2 + $0x38] ss:$12 sps:$4 sm:$0xff]  }
  0x2e   :  { %2463 = vmatpush3.bf16.msra.mxu0 %v2734_v32  ;;  %v3308_v11 = vld [vmem:[%s4020_s2 + $0x50] ss:$12 sps:$4 sm:$0xff]   ;;  %v3315_v12 = vld [vmem:[%s4020_s2 + $0x68] ss:$12 sps:$4 sm:$0xff]   ;;  %v3322_v13 = vld [vmem:[%s4020_s2 + $0x80] ss:$12 sps:$4 sm:$0xff]  }
  0x2f   :  { %2464 = vmatprep.subr.bf16.mxu0 %v3007_v2  ;;  %v3329_v14 = vld [vmem:[%s4020_s2 + $0x98] ss:$12 sps:$4 sm:$0xff]   ;;  %v3336_v15 = vld [vmem:[%s4020_s2 + $0xb0] ss:$12 sps:$4 sm:$0xff]   ;;  %v3377_v32 = vld [vmem:[%s4021_s3 + $0x8] sm:$0xff] }
  0x30   :  { %v3363_v20 = vld [vmem:[%s4021_s3] sm:$0xff]  ;;  %v3368_v22 = vld [vmem:[%s4021_s3 + $0x18] sm:$0xff] }
  0x32   :  { %2465 = vmatpush3.bf16.msra.mxu0 %v2738_v33 }
  0x33   :  { %2466 = vmatprep.subr.bf16.mxu0 %v3007_v2 }
  0x36   :  { %2467 = vmatpush3.bf16.msra.mxu0 %v2742_v34  ;;  %v3382_v34 = vld [vmem:[%s4021_s3 + $0x20] sm:$0xff] }
  0x37   :  { %2468 = vmatprep.subr.bf16.mxu0 %v3007_v2 }
  0x3a   :  { %2469 = vmatpush3.bf16.msra.mxu0 %v2746_v35 }
  0x3b   :  { %2470 = vmatprep.subr.bf16.mxu0 %v3007_v2 }
  0x3e   :  { %2471 = vmatpush3.bf16.msra.mxu0 %v2750_v36 }
  0x3f   :  { %2472 = vmatprep.subr.bf16.mxu0 %v3007_v2 }
  0x42   :  { %2473 = vmatpush3.bf16.msra.mxu0 %v2754_v59 }
  0x43   :  { %2478 = vmatprep.subr.bf16.mxu0 %v3007_v2 }
  0xf5   :  { %v2315_v37 = vpop.f32.mrb[0].mxu0 }
  0xf6   :  { %v2316_v39 = vpop.f32.mrb[1].mxu0 }
  0xf7   :  { %v2317_v40 = vadd.f32 %v2316_v39, %v2315_v37  ;;  %v2318_v41 = vpop.f32.mrb[2].mxu0 }
  0xf8   :  { %v2319_v42 = vpop.f32.mrb[3].mxu0 }
  0xf9   :  { %v204_v43 = vadd.f32 %v2317_v40, %v2181_v38 }
  0xfb   :  { %v209_v44 = vmax.f32 %v204_v43, 0.0 }
  0xfd   :  { %v210_v46 = vpack.c.bf16 %v209_v44, %v209_v44 }
  0xff   :  { %2455 = vmatmul.mubr.bf16.vlgmr.msra.gmra.mrb[0].mxu1 %v210_v46  ;;  %v3389_v46 = vld [vmem:[%s4022_s4 + $0x5] ss:$0 sm:$0xff] }
 0x100   :  { %604 = vmatpush1.bf16.msra.mxu1 %v3169_v45  ;;  %635 = vmatprep.mubr.bf16.mxu1 %v3009_v62 }
 0x101   :  { %605 = vmatprep.subr.bf16.mxu1 %v3174_v47 }
 0x104   :  { %606 = vmatpush1.bf16.msra.mxu1 %v3180_v48 }
 0x105   :  { %607 = vmatprep.subr.bf16.mxu1 %v3186_v49 }
 0x108   :  { %608 = vmatpush1.bf16.msra.mxu1 %v3192_v50 }
 0x109   :  { %609 = vmatprep.subr.bf16.mxu1 %v3198_v51 }
 0x10c   :  { %610 = vmatpush1.bf16.msra.mxu1 %v3204_v52 }
 0x10d   :  { %611 = vmatprep.subr.bf16.mxu1 %v3210_v53 }
 0x110   :  { %612 = vmatpush1.bf16.msra.mxu1 %v3216_v54 }
 0x111   :  { %613 = vmatprep.subr.bf16.mxu1 %v3222_v55 }
 0x114   :  { %614 = vmatpush1.bf16.msra.mxu1 %v3228_v56 }
 0x115   :  { %615 = vmatprep.subr.bf16.mxu1 %v3235_v57 }
 0x118   :  { %616 = vmatpush1.bf16.msra.mxu1 %v3240_v58 }
 0x119   :  { %617 = vmatprep.subr.bf16.mxu1 %v3250_v60 }
 0x11c   :  { %618 = vmatpush1.bf16.msra.mxu1 %v3255_v61 }
 0x11d   :  { %750 = vmatprep.subr.bf16.mxu1 %v3135_v30 }
 0x11f   :  { %636 = vmatmul.mubr.bf16.vlgmr.msra.gmra.mrb[4].mxu1 %v3009_v62 }
 0x120   :  { %751 = vmatpush1.bf16.msra.mxu1 %v3169_v45  ;;  %782 = vmatprep.mubr.bf16.mxu1 %v3009_v62 }
 0x121   :  { %752 = vmatprep.subr.bf16.mxu1 %v3174_v47 }
 0x124   :  { %753 = vmatpush1.bf16.msra.mxu1 %v3180_v48 }
 0x125   :  { %754 = vmatprep.subr.bf16.mxu1 %v3186_v49 }
 0x128   :  { %755 = vmatpush1.bf16.msra.mxu1 %v3192_v50 }
 0x129   :  { %756 = vmatprep.subr.bf16.mxu1 %v3198_v51 }
 0x12c   :  { %757 = vmatpush1.bf16.msra.mxu1 %v3204_v52 }
 0x12d   :  { %758 = vmatprep.subr.bf16.mxu1 %v3210_v53 }
 0x130   :  { %759 = vmatpush1.bf16.msra.mxu1 %v3216_v54 }
 0x131   :  { %760 = vmatprep.subr.bf16.mxu1 %v3222_v55 }
 0x134   :  { %761 = vmatpush1.bf16.msra.mxu1 %v3228_v56 }
 0x135   :  { %762 = vmatprep.subr.bf16.mxu1 %v3235_v57 }
 0x138   :  { %763 = vmatpush1.bf16.msra.mxu1 %v3240_v58 }
 0x139   :  { %764 = vmatprep.subr.bf16.mxu1 %v3250_v60 }
 0x13c   :  { %765 = vmatpush1.bf16.msra.mxu1 %v3255_v61 }
 0x13d   :  { %902 = vmatprep.subr.bf16.mxu1 %v3135_v30 }
 0x1d2   :  { %v314_v0 = vpop.f32.mrb[0].mxu1 }
 0x1d3   :  { %v315_v1 = vadd.f32 %v2198_v63, %v314_v0  ;;  %v2456_v3 = vpop.f32.mrb[1].mxu1 }
 0x1d4   :  { %v317_v4 = vpop.f32.mrb[2].mxu1 }
 0x1d5   :  { %v320_v5 = vmax.f32 %v315_v1, 0.0  ;;  %v2457_v6 = vpop.f32.mrb[3].mxu1 }
 0x1d6   :  { %v3395_v6 = vld [vmem:[%s4021_s3 + $0x10] sm:$0xff] }
 0x1d7   :  { %v321_v8 = vpack.c.bf16 %v320_v5, %v320_v5 }
 0x1d9   :  { %2475 = vmatmul.mubr.bf16.vlgmr.msra.gmra.mrb[4].mxu0 %v321_v8 }
 0x1da   :  { %2479 = vmatpush3.bf16.msra.mxu0 %v3286_v7  ;;  %2494 = vmatprep.mubr.msk.bf16.mxu0 %vm3008_vm0, %v3007_v2 }
 0x1db   :  { %2480 = vmatprep.subr.bf16.mxu0 %v3007_v2 }
 0x1de   :  { %2481 = vmatpush3.bf16.msra.mxu0 %v3292_v9 }
 0x1df   :  { %2482 = vmatprep.subr.bf16.mxu0 %v3007_v2 }
 0x1e2   :  { %2483 = vmatpush3.bf16.msra.mxu0 %v3301_v10 }
 0x1e3   :  { %2484 = vmatprep.subr.bf16.mxu0 %v3007_v2 }
 0x1e6   :  { %2485 = vmatpush3.bf16.msra.mxu0 %v3308_v11 }
 0x1e7   :  { %2486 = vmatprep.subr.bf16.mxu0 %v3007_v2 }
 0x1ea   :  { %2487 = vmatpush3.bf16.msra.mxu0 %v3315_v12 }
 0x1eb   :  { %2488 = vmatprep.subr.bf16.mxu0 %v3007_v2 }
 0x1ee   :  { %2489 = vmatpush3.bf16.msra.mxu0 %v3322_v13 }
 0x1ef   :  { %2490 = vmatprep.subr.bf16.mxu0 %v3007_v2 }
 0x1f2   :  { %2491 = vmatpush3.bf16.msra.mxu0 %v3329_v14  ;;  %v637_v16 = vpop.f32.mrb[4].mxu1 }
 0x1f3   :  { %2492 = vmatprep.subr.bf16.mxu0 %v3007_v2  ;;  %v639_v17 = vpop.f32.mrb[5].mxu1  ;;  %v685_v21 = vrot.slane %v637_v16, 1  ;;  %v688_v23 = vadd.f32 %v637_v16, %v3363_v20 }
 0x1f4   :  { %v641_v18 = vpop.f32.mrb[6].mxu1  ;;  %v703_v33 = vrot.slane %v639_v17, 1  ;;  %v706_v35 = vadd.f32 %v639_v17, %v3377_v32 }
 0x1f5   :  { %v642_v19 = vpop.f32.mrb[7].mxu1  ;;  %v689_v24 = vadd.f32 %v685_v21, %v3368_v22  ;;  %v2241_v27 = vmul.f32 -1.442695, %v688_v23 }
 0x1f6   :  { %2493 = vmatpush3.bf16.msra.mxu0 %v3336_v15  ;;  %v707_v36 = vadd.f32 %v703_v33, %v3382_v34  ;;  %v2243_v37 = vmul.f32 -1.442695, %v706_v35  ;;  %v3400_v19 = vld [vmem:[%s4021_s3 + $0x28] sm:$0xff] }
 0x1f7   :  { %2498 = vmatprep.subr.bf16.mxu0 %v3007_v2  ;;  %v2242_v29 = vmul.f32 -1.442695, %v689_v24  ;;  %2790 = vpow2.f32 %v2241_v27 }
 0x1f8   :  { %v2244_v39 = vmul.f32 -1.442695, %v707_v36 }
 0x1f9   :  { %2495 = vmatmul.mubr.bf16.vlgmr.msra.gmra.mrb[8].mxu0 %v3009_v62  ;;  %2792 = vpow2.f32 %v2242_v29 }
 0x1fa   :  { %2499 = vmatpush3.bf16.msra.mxu0 %v3286_v7  ;;  %2514 = vmatprep.mubr.msk.bf16.mxu0 %vm3008_vm0, %v3007_v2  ;;  %2794 = vpow2.f32 %v2243_v37 }
 0x1fb   :  { %2500 = vmatprep.subr.bf16.mxu0 %v3007_v2  ;;  %2796 = vpow2.f32 %v2244_v39 }
 0x1fe   :  { %2501 = vmatpush3.bf16.msra.mxu0 %v3292_v9 }
 0x1ff   :  { %2502 = vmatprep.subr.bf16.mxu0 %v3007_v2 }
 0x201   :  { %v2791_v38 = vpop.eup %2790 }
 0x202   :  { %2503 = vmatpush3.bf16.msra.mxu0 %v3301_v10  ;;  %v696_v41 = vadd.f32 1.0, %v2791_v38 }
 0x203   :  { %2504 = vmatprep.subr.bf16.mxu0 %v3007_v2  ;;  %v2793_v40 = vpop.eup %2792 }
 0x204   :  { %v697_v42 = vadd.f32 1.0, %v2793_v40  ;;  %2798 = vrcp.f32 %v696_v41  ;;  %v2795_v43 = vpop.eup %2794 }
 0x205   :  { %v2797_v44 = vpop.eup %2796  ;;  %v714_v59 = vadd.f32 1.0, %v2795_v43 }
 0x206   :  { %2505 = vmatpush3.bf16.msra.mxu0 %v3308_v11  ;;  %2800 = vrcp.f32 %v697_v42  ;;  %v715_v1 = vadd.f32 1.0, %v2797_v44 }
 0x207   :  { %2506 = vmatprep.subr.bf16.mxu0 %v3007_v2  ;;  %2802 = vrcp.f32 %v714_v59 }
 0x208   :  { %2804 = vrcp.f32 %v715_v1 }
 0x20a   :  { %2507 = vmatpush3.bf16.msra.mxu0 %v3315_v12 }
 0x20b   :  { %2508 = vmatprep.subr.bf16.mxu0 %v3007_v2 }
 0x20e   :  { %2509 = vmatpush3.bf16.msra.mxu0 %v3322_v13  ;;  %v2799_v63 = vpop.eup %2798 }
 0x20f   :  { %2510 = vmatprep.subr.bf16.mxu0 %v3007_v2 }
 0x210   :  { %v2801_v5 = vpop.eup %2800 }
 0x212   :  { %2511 = vmatpush3.bf16.msra.mxu0 %v3329_v14 }
 0x213   :  { %2512 = vmatprep.subr.bf16.mxu0 %v3007_v2 }
 0x216   :  { %2513 = vmatpush3.bf16.msra.mxu0 %v3336_v15 }
 0x217   :  { %2518 = vmatprep.subr.bf16.mxu0 %v3007_v2 }
 0x2ac   :  { %v3372_v25 = vpop.f32.mrb[4].mxu0 }
 0x2ad   :  { %v2476_v26 = vpop.f32.mrb[5].mxu0 }
 0x2ae   :  { %v428_v28 = vpop.f32.mrb[6].mxu0  ;;  %v2803_v26 = vpop.eup %2802 }
 0x2af   :  { %v2477_v31 = vpop.f32.mrb[7].mxu0  ;;  %v2805_v27 = vpop.eup %2804  ;;  %v731_v28 = vsub.f32 1.0, %v2803_v26  ;;  %v735_v35 = vmul.f32 0.0, %v2803_v26 }
 0x2b0   :  { %v732_v31 = vsub.f32 1.0, %v2805_v27  ;;  %v736_v38 = vmul.f32 0.0, %v2805_v27 }
 0x2cc   :  { %v678_v0 = vpop.f32.mrb[8].mxu0 }
 0x2cd   :  { %v720_v3 = vadd.f32 %v3389_v46, %v678_v0  ;;  %v2496_v4 = vpop.f32.mrb[9].mxu0 }
 0x2ce   :  { %v681_v8 = vpop.f32.mrb[10].mxu0 }
 0x2cf   :  { %v722_v16 = vrot.slane %v720_v3, 1  ;;  %v725_v17 = vmul.f32 %v2799_v63, %v720_v3  ;;  %v2497_v18 = vpop.f32.mrb[11].mxu0 }
 0x2d1   :  { %v726_v21 = vmul.f32 %v2801_v5, %v722_v16  ;;  %v727_v23 = vadd.f32 %v725_v17, %v3395_v6 }
 0x2d3   :  { %v728_v24 = vadd.f32 %v726_v21, %v3400_v19  ;;  %2806 = vtanh.f32 %v727_v23 }
 0x2d5   :  { %2808 = vtanh.f32 %v728_v24 }
 0x2dd   :  { %v2807_v29 = vpop.eup %2806 }
 0x2de   :  { %v733_v33 = vmul.f32 %v2807_v29, %v731_v28 }
 0x2df   :  { %v2809_v36 = vpop.eup %2808 }
 0x2e0   :  { %v734_v37 = vmul.f32 %v2809_v36, %v732_v31  ;;  %v3404_v39 = vadd.f32 %v735_v35, %v733_v33 }
 0x2e2   :  { %v3406_v40 = vadd.f32 %v736_v38, %v734_v37  ;;  %v739_v41 = vpack.c.bf16 %v3404_v39, %v3404_v39 }
 0x2e4   :  { %v740_v42 = vpack.c.bf16 %v3406_v40, %v3406_v40  ;;  %v743_v44 = vunpack.c.l.b16 %v739_v41 }
 0x2e6   :  { %v744_v43 = vunpack.c.l.b16 %v740_v42 }
 0x2e8   :  { %v745_v59 = vrot.slane %v744_v43, 7 }
 0x2ea   :  { %v747_v63 = vsel %vm746_vm1, %v745_v59, %v743_v44 }
 0x2eb   :  { %v748_v0 = vpack.c.b16 %v747_v63, %v747_v63 }
 0x2ed   :  { %783 = vmatmul.mubr.bf16.vlgmr.msra.gmra.mrb[8].mxu1 %v748_v0  ;;  %2515 = vmatmul.mubr.bf16.vlgmr.msra.gmra.mrb[12].mxu0 %v748_v0 }
 0x2ee   :  { %903 = vmatpush1.bf16.msra.mxu1 %v3169_v45  ;;  %2519 = vmatpush3.bf16.msra.mxu0 %v3286_v7 }
 0x2ef   :  { %904 = vmatprep.subr.bf16.mxu1 %v3174_v47  ;;  %2520 = vmatprep.subr.bf16.mxu0 %v3007_v2 }
 0x2f0   :  { %934 = vmatprep.mubr.bf16.mxu1 %v3009_v62  ;;  %2534 = vmatprep.mubr.msk.bf16.mxu0 %vm3008_vm0, %v3007_v2 }
 0x2f2   :  { %905 = vmatpush1.bf16.msra.mxu1 %v3180_v48  ;;  %2521 = vmatpush3.bf16.msra.mxu0 %v3292_v9 }
 0x2f3   :  { %906 = vmatprep.subr.bf16.mxu1 %v3186_v49  ;;  %2522 = vmatprep.subr.bf16.mxu0 %v3007_v2 }
 0x2f6   :  { %907 = vmatpush1.bf16.msra.mxu1 %v3192_v50  ;;  %2523 = vmatpush3.bf16.msra.mxu0 %v3301_v10 }
 0x2f7   :  { %908 = vmatprep.subr.bf16.mxu1 %v3198_v51  ;;  %2524 = vmatprep.subr.bf16.mxu0 %v3007_v2 }
 0x2fa   :  { %909 = vmatpush1.bf16.msra.mxu1 %v3204_v52  ;;  %2525 = vmatpush3.bf16.msra.mxu0 %v3308_v11 }
 0x2fb   :  { %910 = vmatprep.subr.bf16.mxu1 %v3210_v53  ;;  %2526 = vmatprep.subr.bf16.mxu0 %v3007_v2 }
 0x2fe   :  { %911 = vmatpush1.bf16.msra.mxu1 %v3216_v54  ;;  %2527 = vmatpush3.bf16.msra.mxu0 %v3315_v12 }
 0x2ff   :  { %912 = vmatprep.subr.bf16.mxu1 %v3222_v55  ;;  %2528 = vmatprep.subr.bf16.mxu0 %v3007_v2 }
 0x302   :  { %913 = vmatpush1.bf16.msra.mxu1 %v3228_v56  ;;  %2529 = vmatpush3.bf16.msra.mxu0 %v3322_v13 }
 0x303   :  { %914 = vmatprep.subr.bf16.mxu1 %v3235_v57  ;;  %2530 = vmatprep.subr.bf16.mxu0 %v3007_v2 }
 0x306   :  { %915 = vmatpush1.bf16.msra.mxu1 %v3240_v58  ;;  %2531 = vmatpush3.bf16.msra.mxu0 %v3329_v14 }
 0x307   :  { %916 = vmatprep.subr.bf16.mxu1 %v3250_v60  ;;  %2532 = vmatprep.subr.bf16.mxu0 %v3007_v2 }
 0x30a   :  { %917 = vmatpush1.bf16.msra.mxu1 %v3255_v61  ;;  %2533 = vmatpush3.bf16.msra.mxu0 %v3336_v15 }
 0x30b   :  { %1058 = vmatprep.subr.bf16.mxu1 %v3135_v30  ;;  %2538 = vmatprep.subr.bf16.mxu0 %v3007_v2 }
 0x3c0   :  { %v784_v1 = vpop.f32.mrb[8].mxu1  ;;  %v825_v3 = vpop.f32.mrb[12].mxu0 }
 0x3c1   :  { %v832_v4 = vrot.slane %v784_v1, 7  ;;  %v836_v5 = vadd.f32 %v784_v1, %v3368_v22  ;;  %v786_v8 = vpop.f32.mrb[9].mxu1  ;;  %v2516_v16 = vpop.f32.mrb[13].mxu0  ;;  %v867_v63 = vadd.f32 %v3389_v46, %v825_v3  ;;  %v885_v1 = vrot.slane %v3406_v40, 7 }
 0x3c2   :  { %v850_v17 = vrot.slane %v786_v8, 7  ;;  %v854_v18 = vadd.f32 %v786_v8, %v3382_v34  ;;  %v788_v21 = vpop.f32.mrb[10].mxu1  ;;  %v828_v23 = vpop.f32.mrb[14].mxu0 }
 0x3c3   :  { %v835_v24 = vadd.f32 %v832_v4, %v3363_v20  ;;  %v2246_v26 = vmul.f32 -1.442695, %v836_v5  ;;  %v789_v27 = vpop.f32.mrb[11].mxu1  ;;  %v2517_v28 = vpop.f32.mrb[15].mxu0  ;;  %v869_v5 = vrot.slane %v867_v63, 7 }
 0x3c4   :  { %v853_v29 = vadd.f32 %v850_v17, %v3377_v32  ;;  %v2248_v31 = vmul.f32 -1.442695, %v854_v18  ;;  %v884_v17 = vrot.slane %v3404_v39, 7 }
 0x3c5   :  { %v2245_v33 = vmul.f32 -1.442695, %v835_v24  ;;  %2810 = vpow2.f32 %v2246_v26 }
 0x3c6   :  { %v2247_v35 = vmul.f32 -1.442695, %v853_v29  ;;  %2812 = vpow2.f32 %v2248_v31 }
 0x3c7   :  { %2814 = vpow2.f32 %v2245_v33 }
 0x3c8   :  { %2816 = vpow2.f32 %v2247_v35 }
 0x3cf   :  { %v2811_v36 = vpop.eup %2810 }
 0x3d0   :  { %v2813_v37 = vpop.eup %2812  ;;  %v844_v38 = vadd.f32 1.0, %v2811_v36 }
 0x3d1   :  { %v2815_v41 = vpop.eup %2814  ;;  %v862_v42 = vadd.f32 1.0, %v2813_v37 }
 0x3d2   :  { %v2817_v43 = vpop.eup %2816  ;;  %v843_v44 = vadd.f32 1.0, %v2815_v41  ;;  %2818 = vrcp.f32 %v844_v38 }
 0x3d3   :  { %v861_v59 = vadd.f32 1.0, %v2817_v43  ;;  %2820 = vrcp.f32 %v862_v42 }
 0x3d4   :  { %2822 = vrcp.f32 %v843_v44 }
 0x3d5   :  { %2824 = vrcp.f32 %v861_v59 }
 0x3dc   :  { %v2819_v0 = vpop.eup %2818 }
 0x3dd   :  { %v2821_v4 = vpop.eup %2820  ;;  %v873_v8 = vmul.f32 %v2819_v0, %v867_v63 }
 0x3de   :  { %v2823_v16 = vpop.eup %2822  ;;  %v889_v18 = vmul.f32 %v2821_v4, %v885_v1  ;;  %v879_v3 = vsub.f32 1.0, %v2821_v4 }
 0x3df   :  { %v2825_v21 = vpop.eup %2824  ;;  %v872_v23 = vmul.f32 %v2823_v16, %v869_v5  ;;  %v875_v24 = vadd.f32 %v873_v8, %v3400_v19 }
 0x3e0   :  { %v888_v26 = vmul.f32 %v2825_v21, %v884_v17  ;;  %v878_v29 = vsub.f32 1.0, %v2825_v21 }
 0x3e1   :  { %v874_v27 = vadd.f32 %v872_v23, %v3395_v6  ;;  %2826 = vtanh.f32 %v875_v24 }
 0x3e3   :  { %2828 = vtanh.f32 %v874_v27 }
 0x3eb   :  { %v2827_v28 = vpop.eup %2826 }
 0x3ec   :  { %v881_v40 = vmul.f32 %v2827_v28, %v879_v3 }
 0x3ed   :  { %v2829_v31 = vpop.eup %2828 }
 0x3ee   :  { %v880_v33 = vmul.f32 %v2829_v31, %v878_v29  ;;  %v3457_v35 = vadd.f32 %v889_v18, %v881_v40 }
 0x3f0   :  { %v3459_v36 = vadd.f32 %v888_v26, %v880_v33  ;;  %v893_v37 = vpack.c.bf16 %v3457_v35, %v3457_v35 }
 0x3f2   :  { %v892_v39 = vpack.c.bf16 %v3459_v36, %v3459_v36  ;;  %v897_v41 = vunpack.c.l.b16 %v893_v37 }
 0x3f4   :  { %v896_v38 = vunpack.c.l.b16 %v892_v39 }
 0x3f6   :  { %v898_v42 = vrot.slane %v896_v38, 1 }
 0x3f8   :  { %v899_v43 = vsel %vm746_vm1, %v897_v41, %v898_v42 }
 0x3f9   :  { %v900_v44 = vpack.c.b16 %v899_v43, %v899_v43 }
 0x3fb   :  { %935 = vmatmul.mubr.bf16.vlgmr.msra.gmra.mrb[12].mxu1 %v900_v44  ;;  %2535 = vmatmul.mubr.bf16.vlgmr.msra.gmra.mrb[16].mxu0 %v900_v44 }
 0x3fc   :  { %1059 = vmatpush1.bf16.msra.mxu1 %v3169_v45  ;;  %2539 = vmatpush3.bf16.msra.mxu0 %v3286_v7 }
 0x3fd   :  { %1060 = vmatprep.subr.bf16.mxu1 %v3174_v47  ;;  %2540 = vmatprep.subr.bf16.mxu0 %v3007_v2 }
 0x3fe   :  { %1090 = vmatprep.mubr.bf16.mxu1 %v3009_v62  ;;  %2554 = vmatprep.mubr.msk.bf16.mxu0 %vm3008_vm0, %v3007_v2 }
 0x400   :  { %1061 = vmatpush1.bf16.msra.mxu1 %v3180_v48  ;;  %2541 = vmatpush3.bf16.msra.mxu0 %v3292_v9 }
 0x401   :  { %1062 = vmatprep.subr.bf16.mxu1 %v3186_v49  ;;  %2542 = vmatprep.subr.bf16.mxu0 %v3007_v2 }
 0x404   :  { %1063 = vmatpush1.bf16.msra.mxu1 %v3192_v50  ;;  %2543 = vmatpush3.bf16.msra.mxu0 %v3301_v10 }
 0x405   :  { %1064 = vmatprep.subr.bf16.mxu1 %v3198_v51  ;;  %2544 = vmatprep.subr.bf16.mxu0 %v3007_v2 }
 0x408   :  { %1065 = vmatpush1.bf16.msra.mxu1 %v3204_v52  ;;  %2545 = vmatpush3.bf16.msra.mxu0 %v3308_v11 }
 0x409   :  { %1066 = vmatprep.subr.bf16.mxu1 %v3210_v53  ;;  %2546 = vmatprep.subr.bf16.mxu0 %v3007_v2 }
 0x40c   :  { %1067 = vmatpush1.bf16.msra.mxu1 %v3216_v54  ;;  %2547 = vmatpush3.bf16.msra.mxu0 %v3315_v12 }
 0x40d   :  { %1068 = vmatprep.subr.bf16.mxu1 %v3222_v55  ;;  %2548 = vmatprep.subr.bf16.mxu0 %v3007_v2 }
 0x410   :  { %1069 = vmatpush1.bf16.msra.mxu1 %v3228_v56  ;;  %2549 = vmatpush3.bf16.msra.mxu0 %v3322_v13 }
 0x411   :  { %1070 = vmatprep.subr.bf16.mxu1 %v3235_v57  ;;  %2550 = vmatprep.subr.bf16.mxu0 %v3007_v2 }
 0x414   :  { %1071 = vmatpush1.bf16.msra.mxu1 %v3240_v58  ;;  %2551 = vmatpush3.bf16.msra.mxu0 %v3329_v14 }
 0x415   :  { %1072 = vmatprep.subr.bf16.mxu1 %v3250_v60  ;;  %2552 = vmatprep.subr.bf16.mxu0 %v3007_v2 }
 0x418   :  { %1073 = vmatpush1.bf16.msra.mxu1 %v3255_v61  ;;  %2553 = vmatpush3.bf16.msra.mxu0 %v3336_v15 }
 0x419   :  { %1214 = vmatprep.subr.bf16.mxu1 %v3135_v30  ;;  %2558 = vmatprep.subr.bf16.mxu0 %v3007_v2 }
 0x4ce   :  { %v936_v59 = vpop.f32.mrb[12].mxu1  ;;  %v977_v63 = vpop.f32.mrb[16].mxu0 }
 0x4cf   :  { %v984_v0 = vrot.slane %v936_v59, 6  ;;  %v985_v1 = vrot.slane %v936_v59, 7  ;;  %v938_v4 = vpop.f32.mrb[13].mxu1  ;;  %v2536_v5 = vpop.f32.mrb[17].mxu0  ;;  %v1021_v59 = vadd.f32 %v3389_v46, %v977_v63 }
 0x4d0   :  { %v1003_v8 = vrot.slane %v938_v4, 6  ;;  %v1004_v16 = vrot.slane %v938_v4, 7  ;;  %v940_v17 = vpop.f32.mrb[14].mxu1  ;;  %v980_v18 = vpop.f32.mrb[18].mxu0 }
 0x4d1   :  { %v988_v21 = vadd.f32 %v984_v0, %v3363_v20  ;;  %v989_v23 = vadd.f32 %v985_v1, %v3368_v22  ;;  %v941_v24 = vpop.f32.mrb[15].mxu1  ;;  %v2537_v26 = vpop.f32.mrb[19].mxu0  ;;  %v1023_v0 = vrot.slane %v1021_v59, 6  ;;  %v1024_v4 = vrot.slane %v1021_v59, 7 }
 0x4d2   :  { %v1007_v27 = vadd.f32 %v1003_v8, %v3377_v32  ;;  %v1008_v3 = vadd.f32 %v1004_v16, %v3382_v34  ;;  %v1039_v8 = vrot.slane %v3459_v36, 7  ;;  %v1040_v18 = vrot.slane %v3457_v35, 7 }
 0x4d3   :  { %v2249_v28 = vmul.f32 -1.442695, %v988_v21  ;;  %v2250_v29 = vmul.f32 -1.442695, %v989_v23 }
 0x4d4   :  { %v2251_v40 = vmul.f32 -1.442695, %v1007_v27  ;;  %v2252_v31 = vmul.f32 -1.442695, %v1008_v3 }
 0x4d5   :  { %2830 = vpow2.f32 %v2249_v28 }
 0x4d6   :  { %2832 = vpow2.f32 %v2250_v29 }
 0x4d7   :  { %2834 = vpow2.f32 %v2251_v40 }
 0x4d8   :  { %2836 = vpow2.f32 %v2252_v31 }
 0x4df   :  { %v2831_v33 = vpop.eup %2830 }
 0x4e0   :  { %v2833_v39 = vpop.eup %2832  ;;  %v996_v37 = vadd.f32 1.0, %v2831_v33 }
 0x4e1   :  { %v2835_v38 = vpop.eup %2834  ;;  %v997_v41 = vadd.f32 1.0, %v2833_v39 }
 0x4e2   :  { %v2837_v42 = vpop.eup %2836  ;;  %2838 = vrcp.f32 %v996_v37  ;;  %v1015_v43 = vadd.f32 1.0, %v2835_v38 }
 0x4e3   :  { %2840 = vrcp.f32 %v997_v41  ;;  %v1016_v44 = vadd.f32 1.0, %v2837_v42 }
 0x4e4   :  { %2842 = vrcp.f32 %v1015_v43 }
 0x4e5   :  { %2844 = vrcp.f32 %v1016_v44 }
 0x4ec   :  { %v2839_v1 = vpop.eup %2838 }
 0x4ed   :  { %v2841_v5 = vpop.eup %2840  ;;  %v1027_v16 = vmul.f32 %v2839_v1, %v1023_v0 }
 0x4ee   :  { %v2843_v17 = vpop.eup %2842  ;;  %v1028_v21 = vmul.f32 %v2841_v5, %v1024_v4 }
 0x4ef   :  { %v2845_v23 = vpop.eup %2844  ;;  %v1029_v24 = vadd.f32 %v1027_v16, %v3395_v6  ;;  %v1043_v26 = vmul.f32 %v2843_v17, %v1039_v8  ;;  %v1033_v63 = vsub.f32 1.0, %v2843_v17 }
 0x4f0   :  { %v1030_v27 = vadd.f32 %v1028_v21, %v3400_v19  ;;  %v1044_v3 = vmul.f32 %v2845_v23, %v1040_v18  ;;  %v1034_v29 = vsub.f32 1.0, %v2845_v23 }
 0x4f1   :  { %2846 = vtanh.f32 %v1029_v24 }
 0x4f2   :  { %2848 = vtanh.f32 %v1030_v27 }
 0x4fb   :  { %v2847_v28 = vpop.eup %2846 }
 0x4fc   :  { %v2849_v40 = vpop.eup %2848  ;;  %v1035_v31 = vmul.f32 %v2847_v28, %v1033_v63 }
 0x4fd   :  { %v1036_v36 = vmul.f32 %v2849_v40, %v1034_v29 }
 0x4fe   :  { %v3510_v33 = vadd.f32 %v1043_v26, %v1035_v31 }
 0x4ff   :  { %v3512_v39 = vadd.f32 %v1044_v3, %v1036_v36 }
 0x500   :  { %v1047_v35 = vpack.c.bf16 %v3510_v33, %v3510_v33 }
 0x501   :  { %v1048_v37 = vpack.c.bf16 %v3512_v39, %v3512_v39 }
 0x502   :  { %v1051_v38 = vunpack.c.l.b16 %v1047_v35 }
 0x503   :  { %v1052_v41 = vunpack.c.l.b16 %v1048_v37 }
 0x504   :  { %v1053_v42 = vrot.slane %v1051_v38, 2 }
 0x505   :  { %v1054_v43 = vrot.slane %v1052_v41, 1 }
 0x507   :  { %v1055_v44 = vsel %vm746_vm1, %v1054_v43, %v1053_v42 }
 0x508   :  { %v1056_v59 = vpack.c.b16 %v1055_v44, %v1055_v44 }
 0x50a   :  { %1091 = vmatmul.mubr.bf16.vlgmr.msra.gmra.mrb[16].mxu1 %v1056_v59  ;;  %2555 = vmatmul.mubr.bf16.vlgmr.msra.gmra.mrb[20].mxu0 %v1056_v59 }
 0x50b   :  { %1215 = vmatpush1.bf16.msra.mxu1 %v3169_v45  ;;  %2559 = vmatpush3.bf16.msra.mxu0 %v3286_v7 }
 0x50c   :  { %1216 = vmatprep.subr.bf16.mxu1 %v3174_v47  ;;  %2560 = vmatprep.subr.bf16.mxu0 %v3007_v2 }
 0x50d   :  { %1246 = vmatprep.mubr.bf16.mxu1 %v3009_v62  ;;  %2574 = vmatprep.mubr.msk.bf16.mxu0 %vm3008_vm0, %v3007_v2 }
 0x50f   :  { %1217 = vmatpush1.bf16.msra.mxu1 %v3180_v48  ;;  %2561 = vmatpush3.bf16.msra.mxu0 %v3292_v9 }
 0x510   :  { %1218 = vmatprep.subr.bf16.mxu1 %v3186_v49  ;;  %2562 = vmatprep.subr.bf16.mxu0 %v3007_v2 }
 0x513   :  { %1219 = vmatpush1.bf16.msra.mxu1 %v3192_v50  ;;  %2563 = vmatpush3.bf16.msra.mxu0 %v3301_v10 }
 0x514   :  { %1220 = vmatprep.subr.bf16.mxu1 %v3198_v51  ;;  %2564 = vmatprep.subr.bf16.mxu0 %v3007_v2 }
 0x517   :  { %1221 = vmatpush1.bf16.msra.mxu1 %v3204_v52  ;;  %2565 = vmatpush3.bf16.msra.mxu0 %v3308_v11 }
 0x518   :  { %1222 = vmatprep.subr.bf16.mxu1 %v3210_v53  ;;  %2566 = vmatprep.subr.bf16.mxu0 %v3007_v2 }
 0x51b   :  { %1223 = vmatpush1.bf16.msra.mxu1 %v3216_v54  ;;  %2567 = vmatpush3.bf16.msra.mxu0 %v3315_v12 }
 0x51c   :  { %1224 = vmatprep.subr.bf16.mxu1 %v3222_v55  ;;  %2568 = vmatprep.subr.bf16.mxu0 %v3007_v2 }
 0x51f   :  { %1225 = vmatpush1.bf16.msra.mxu1 %v3228_v56  ;;  %2569 = vmatpush3.bf16.msra.mxu0 %v3322_v13 }
 0x520   :  { %1226 = vmatprep.subr.bf16.mxu1 %v3235_v57  ;;  %2570 = vmatprep.subr.bf16.mxu0 %v3007_v2 }
 0x523   :  { %1227 = vmatpush1.bf16.msra.mxu1 %v3240_v58  ;;  %2571 = vmatpush3.bf16.msra.mxu0 %v3329_v14 }
 0x524   :  { %1228 = vmatprep.subr.bf16.mxu1 %v3250_v60  ;;  %2572 = vmatprep.subr.bf16.mxu0 %v3007_v2 }
 0x527   :  { %1229 = vmatpush1.bf16.msra.mxu1 %v3255_v61  ;;  %2573 = vmatpush3.bf16.msra.mxu0 %v3336_v15 }
 0x528   :  { %1370 = vmatprep.subr.bf16.mxu1 %v3135_v30  ;;  %2578 = vmatprep.subr.bf16.mxu0 %v3007_v2 }
 0x5dd   :  { %v1092_v0 = vpop.f32.mrb[16].mxu1  ;;  %v1133_v1 = vpop.f32.mrb[20].mxu0 }
 0x5de   :  { %v1140_v4 = vrot.slane %v1092_v0, 5  ;;  %v1141_v5 = vrot.slane %v1092_v0, 6  ;;  %v1094_v8 = vpop.f32.mrb[17].mxu1  ;;  %v2556_v16 = vpop.f32.mrb[21].mxu0  ;;  %v1177_v59 = vadd.f32 %v3389_v46, %v1133_v1 }
 0x5df   :  { %v1159_v17 = vrot.slane %v1094_v8, 5  ;;  %v1160_v18 = vrot.slane %v1094_v8, 6  ;;  %v1096_v21 = vpop.f32.mrb[18].mxu1  ;;  %v1136_v23 = vpop.f32.mrb[22].mxu0  ;;  %v1195_v16 = vrot.slane %v3510_v33, 7 }
 0x5e0   :  { %v1144_v24 = vadd.f32 %v1140_v4, %v3363_v20  ;;  %v1145_v26 = vadd.f32 %v1141_v5, %v3368_v22  ;;  %v1097_v27 = vpop.f32.mrb[19].mxu1  ;;  %v2557_v3 = vpop.f32.mrb[23].mxu0  ;;  %v1179_v0 = vrot.slane %v1177_v59, 5  ;;  %v1180_v5 = vrot.slane %v1177_v59, 6 }
 0x5e1   :  { %v1163_v30 = vadd.f32 %v1159_v17, %v3377_v32  ;;  %v1164_v63 = vadd.f32 %v1160_v18, %v3382_v34  ;;  %v1196_v21 = vrot.slane %v3512_v39, 7 }
 0x5e2   :  { %v2253_v28 = vmul.f32 -1.442695, %v1144_v24  ;;  %v2254_v29 = vmul.f32 -1.442695, %v1145_v26 }
 0x5e3   :  { %v2255_v40 = vmul.f32 -1.442695, %v1163_v30  ;;  %v2256_v31 = vmul.f32 -1.442695, %v1164_v63 }
 0x5e4   :  { %2850 = vpow2.f32 %v2253_v28 }
 0x5e5   :  { %2852 = vpow2.f32 %v2254_v29 }
 0x5e6   :  { %2854 = vpow2.f32 %v2255_v40 }
 0x5e7   :  { %2856 = vpow2.f32 %v2256_v31 }
 0x5ee   :  { %v2851_v36 = vpop.eup %2850 }
 0x5ef   :  { %v2853_v35 = vpop.eup %2852  ;;  %v1152_v37 = vadd.f32 1.0, %v2851_v36 }
 0x5f0   :  { %v2855_v38 = vpop.eup %2854  ;;  %v1153_v41 = vadd.f32 1.0, %v2853_v35 }
 0x5f1   :  { %v2857_v42 = vpop.eup %2856  ;;  %2858 = vrcp.f32 %v1152_v37  ;;  %v1171_v43 = vadd.f32 1.0, %v2855_v38 }
 0x5f2   :  { %2860 = vrcp.f32 %v1153_v41  ;;  %v1172_v44 = vadd.f32 1.0, %v2857_v42 }
 0x5f3   :  { %2862 = vrcp.f32 %v1171_v43 }
 0x5f4   :  { %2864 = vrcp.f32 %v1172_v44 }
 0x5fb   :  { %v2859_v4 = vpop.eup %2858 }
 0x5fc   :  { %v2861_v8 = vpop.eup %2860  ;;  %v1183_v17 = vmul.f32 %v2859_v4, %v1179_v0 }
 0x5fd   :  { %v2863_v18 = vpop.eup %2862  ;;  %v1184_v23 = vmul.f32 %v2861_v8, %v1180_v5 }
 0x5fe   :  { %v2865_v24 = vpop.eup %2864  ;;  %v1185_v26 = vadd.f32 %v1183_v17, %v3395_v6  ;;  %v1199_v27 = vmul.f32 %v2863_v18, %v1195_v16  ;;  %v1189_v1 = vsub.f32 1.0, %v2863_v18 }
 0x5ff   :  { %v1186_v3 = vadd.f32 %v1184_v23, %v3400_v19  ;;  %v1200_v30 = vmul.f32 %v2865_v24, %v1196_v21  ;;  %v1190_v28 = vsub.f32 1.0, %v2865_v24 }
 0x600   :  { %2866 = vtanh.f32 %v1185_v26 }
 0x601   :  { %2868 = vtanh.f32 %v1186_v3 }
 0x60a   :  { %v2867_v63 = vpop.eup %2866 }
 0x60b   :  { %v2869_v29 = vpop.eup %2868  ;;  %v1191_v40 = vmul.f32 %v2867_v63, %v1189_v1 }
 0x60c   :  { %v1192_v33 = vmul.f32 %v2869_v29, %v1190_v28 }
 0x60d   :  { %v3563_v31 = vadd.f32 %v1199_v27, %v1191_v40 }
 0x60e   :  { %v3565_v36 = vadd.f32 %v1200_v30, %v1192_v33 }
 0x60f   :  { %v1203_v39 = vpack.c.bf16 %v3563_v31, %v3563_v31  ;;  %v1351_v18 = vrot.slane %v3563_v31, 7 }
 0x610   :  { %v1204_v35 = vpack.c.bf16 %v3565_v36, %v3565_v36  ;;  %v1352_v24 = vrot.slane %v3565_v36, 7 }
 0x611   :  { %v1207_v37 = vunpack.c.l.b16 %v1203_v39 }
 0x612   :  { %v1208_v38 = vunpack.c.l.b16 %v1204_v35 }
 0x613   :  { %v1209_v41 = vrot.slane %v1207_v37, 3 }
 0x614   :  { %v1210_v42 = vrot.slane %v1208_v38, 2 }
 0x616   :  { %v1211_v43 = vsel %vm746_vm1, %v1210_v42, %v1209_v41 }
 0x617   :  { %v1212_v44 = vpack.c.b16 %v1211_v43, %v1211_v43 }
 0x619   :  { %1247 = vmatmul.mubr.bf16.vlgmr.msra.gmra.mrb[20].mxu1 %v1212_v44  ;;  %2575 = vmatmul.mubr.bf16.vlgmr.msra.gmra.mrb[24].mxu0 %v1212_v44  ;;  %v3633_v44 = vld [vmem:[%s4020_s2] ss:$12 sps:$4 sm:$0xff]  }
 0x61a   :  { %1371 = vmatpush1.bf16.msra.mxu1 %v3169_v45  ;;  %2579 = vmatpush3.bf16.msra.mxu0 %v3286_v7  ;;  %v3608_v45 = vld [vmem:[%s4020_s2 + $0x4] ss:$12 sps:$4 sm:$0xff]  }
 0x61b   :  { %1372 = vmatprep.subr.bf16.mxu1 %v3174_v47  ;;  %2580 = vmatprep.subr.bf16.mxu0 %v3007_v2 }
 0x61c   :  { %1402 = vmatprep.mubr.bf16.mxu1 %v3009_v62  ;;  %2594 = vmatprep.mubr.msk.bf16.mxu0 %vm3008_vm0, %v3007_v2 }
 0x61e   :  { %1373 = vmatpush1.bf16.msra.mxu1 %v3180_v48  ;;  %2581 = vmatpush3.bf16.msra.mxu0 %v3292_v9 }
 0x61f   :  { %1374 = vmatprep.subr.bf16.mxu1 %v3186_v49  ;;  %2582 = vmatprep.subr.bf16.mxu0 %v3007_v2 }
 0x622   :  { %1375 = vmatpush1.bf16.msra.mxu1 %v3192_v50  ;;  %2583 = vmatpush3.bf16.msra.mxu0 %v3301_v10 }
 0x623   :  { %1376 = vmatprep.subr.bf16.mxu1 %v3198_v51  ;;  %2584 = vmatprep.subr.bf16.mxu0 %v3007_v2 }
 0x626   :  { %1377 = vmatpush1.bf16.msra.mxu1 %v3204_v52  ;;  %2585 = vmatpush3.bf16.msra.mxu0 %v3308_v11 }
 0x627   :  { %1378 = vmatprep.subr.bf16.mxu1 %v3210_v53  ;;  %2586 = vmatprep.subr.bf16.mxu0 %v3007_v2 }
 0x62a   :  { %1379 = vmatpush1.bf16.msra.mxu1 %v3216_v54  ;;  %2587 = vmatpush3.bf16.msra.mxu0 %v3315_v12 }
 0x62b   :  { %1380 = vmatprep.subr.bf16.mxu1 %v3222_v55  ;;  %2588 = vmatprep.subr.bf16.mxu0 %v3007_v2 }
 0x62e   :  { %1381 = vmatpush1.bf16.msra.mxu1 %v3228_v56  ;;  %2589 = vmatpush3.bf16.msra.mxu0 %v3322_v13 }
 0x62f   :  { %1382 = vmatprep.subr.bf16.mxu1 %v3235_v57  ;;  %2590 = vmatprep.subr.bf16.mxu0 %v3007_v2 }
 0x632   :  { %1383 = vmatpush1.bf16.msra.mxu1 %v3240_v58  ;;  %2591 = vmatpush3.bf16.msra.mxu0 %v3329_v14 }
 0x633   :  { %1384 = vmatprep.subr.bf16.mxu1 %v3250_v60  ;;  %2592 = vmatprep.subr.bf16.mxu0 %v3007_v2 }
 0x636   :  { %1385 = vmatpush1.bf16.msra.mxu1 %v3255_v61  ;;  %2593 = vmatpush3.bf16.msra.mxu0 %v3336_v15 }
 0x637   :  { %1526 = vmatprep.subr.bf16.mxu1 %v3608_v45  ;;  %2598 = vmatprep.subr.bf16.mxu0 %v3007_v2 }
 0x6ec   :  { %v1248_v47 = vpop.f32.mrb[20].mxu1  ;;  %v1289_v48 = vpop.f32.mrb[24].mxu0 }
 0x6ed   :  { %v1296_v49 = vrot.slane %v1248_v47, 4  ;;  %v1297_v50 = vrot.slane %v1248_v47, 5  ;;  %v1250_v51 = vpop.f32.mrb[21].mxu1  ;;  %v2576_v52 = vpop.f32.mrb[25].mxu0  ;;  %v3639_v47 = vld [vmem:[%s4020_s2 + $0x8] ss:$12 sps:$4 sm:$0xff]  }
 0x6ee   :  { %v1315_v53 = vrot.slane %v1250_v51, 4  ;;  %v1316_v54 = vrot.slane %v1250_v51, 5  ;;  %v1252_v55 = vpop.f32.mrb[22].mxu1  ;;  %v1292_v56 = vpop.f32.mrb[26].mxu0  ;;  %v3667_v51 = vld [vmem:[%s4020_s2 + $0x34] ss:$12 sps:$4 sm:$0xff]  }
 0x6ef   :  { %v1300_v57 = vadd.f32 %v1296_v49, %v3363_v20  ;;  %v1301_v58 = vadd.f32 %v1297_v50, %v3368_v22  ;;  %v1253_v60 = vpop.f32.mrb[23].mxu1  ;;  %v2577_v61 = vpop.f32.mrb[27].mxu0  ;;  %v3655_v49 = vld [vmem:[%s4020_s2 + $0x18] ss:$12 sps:$4 sm:$0xff]   ;;  %v3661_v50 = vld [vmem:[%s4020_s2 + $0x20] ss:$12 sps:$4 sm:$0xff]  }
 0x6f0   :  { %v1319_v7 = vadd.f32 %v1315_v53, %v3377_v32  ;;  %v1320_v9 = vadd.f32 %v1316_v54, %v3382_v34  ;;  %v1333_v34 = vadd.f32 %v3389_v46, %v1289_v48  ;;  %v3645_v48 = vld [vmem:[%s4020_s2 + $0x1c] ss:$12 sps:$4 sm:$0xff]   ;;  %v3680_v53 = vld [vmem:[%s4020_s2 + $0x38] ss:$12 sps:$4 sm:$0xff]  }
 0x6f1   :  { %v2257_v10 = vmul.f32 -1.442695, %v1300_v57  ;;  %v2258_v11 = vmul.f32 -1.442695, %v1301_v58  ;;  %v3674_v52 = vld [vmem:[%s4020_s2 + $0x30] ss:$12 sps:$4 sm:$0xff]  }
 0x6f2   :  { %v2259_v12 = vmul.f32 -1.442695, %v1319_v7  ;;  %v2260_v13 = vmul.f32 -1.442695, %v1320_v9  ;;  %v1335_v5 = vrot.slane %v1333_v34, 4  ;;  %v1336_v16 = vrot.slane %v1333_v34, 5 }
 0x6f3   :  { %2870 = vpow2.f32 %v2257_v10  ;;  %v3686_v54 = vld [vmem:[%s4020_s2 + $0x4c] ss:$12 sps:$4 sm:$0xff]   ;;  %v3693_v55 = vld [vmem:[%s4020_s2 + $0x48] ss:$12 sps:$4 sm:$0xff]   ;;  %v3699_v56 = vld [vmem:[%s4020_s2 + $0x50] ss:$12 sps:$4 sm:$0xff]  }
 0x6f4   :  { %2872 = vpow2.f32 %v2258_v11  ;;  %v3705_v57 = vld [vmem:[%s4020_s2 + $0x64] ss:$12 sps:$4 sm:$0xff]   ;;  %v3712_v58 = vld [vmem:[%s4020_s2 + $0x60] ss:$12 sps:$4 sm:$0xff]   ;;  %v3718_v60 = vld [vmem:[%s4020_s2 + $0x68] ss:$12 sps:$4 sm:$0xff]  }
 0x6f5   :  { %2874 = vpow2.f32 %v2259_v12  ;;  %v3724_v61 = vld [vmem:[%s4020_s2 + $0x7c] ss:$12 sps:$4 sm:$0xff]   ;;  %v3731_v7 = vld [vmem:[%s4020_s2 + $0x78] ss:$12 sps:$4 sm:$0xff]   ;;  %v3737_v9 = vld [vmem:[%s4020_s2 + $0x80] ss:$12 sps:$4 sm:$0xff]  }
 0x6f6   :  { %2876 = vpow2.f32 %v2260_v13  ;;  %v3743_v10 = vld [vmem:[%s4020_s2 + $0x94] ss:$12 sps:$4 sm:$0xff]   ;;  %v3750_v11 = vld [vmem:[%s4020_s2 + $0x90] ss:$12 sps:$4 sm:$0xff]   ;;  %v3756_v12 = vld [vmem:[%s4020_s2 + $0x98] ss:$12 sps:$4 sm:$0xff]  }
 0x6f7   :  { %v3762_v13 = vld [vmem:[%s4020_s2 + $0xac] ss:$12 sps:$4 sm:$0xff]  }
 0x6fd   :  { %v2871_v14 = vpop.eup %2870 }
 0x6fe   :  { %v2873_v15 = vpop.eup %2872  ;;  %v1308_v59 = vadd.f32 1.0, %v2871_v14  ;;  %v3769_v14 = vld [vmem:[%s4020_s2 + $0xa8] ss:$12 sps:$4 sm:$0xff]  }
 0x6ff   :  { %v2875_v20 = vpop.eup %2874  ;;  %v1309_v0 = vadd.f32 1.0, %v2873_v15  ;;  %v3775_v15 = vld [vmem:[%s4020_s2 + $0xb0] ss:$12 sps:$4 sm:$0xff]  }
 0x700   :  { %v2877_v22 = vpop.eup %2876  ;;  %2878 = vrcp.f32 %v1308_v59  ;;  %v1327_v4 = vadd.f32 1.0, %v2875_v20 }
 0x701   :  { %2880 = vrcp.f32 %v1309_v0  ;;  %v1328_v32 = vadd.f32 1.0, %v2877_v22 }
 0x702   :  { %2882 = vrcp.f32 %v1327_v4 }
 0x703   :  { %2884 = vrcp.f32 %v1328_v32 }
 0x70a   :  { %v2879_v8 = vpop.eup %2878 }
 0x70b   :  { %v2881_v17 = vpop.eup %2880  ;;  %v1339_v21 = vmul.f32 %v2879_v8, %v1335_v5 }
 0x70c   :  { %v2883_v23 = vpop.eup %2882  ;;  %v1340_v26 = vmul.f32 %v2881_v17, %v1336_v16  ;;  %v3783_v17 = vld [vmem:[%s4021_s3] sm:$0xff] }
 0x70d   :  { %v2885_v27 = vpop.eup %2884  ;;  %v1341_v3 = vadd.f32 %v1339_v21, %v3395_v6  ;;  %v1355_v30 = vmul.f32 %v2883_v23, %v1351_v18  ;;  %v1345_v46 = vsub.f32 1.0, %v2883_v23 }
 0x70e   :  { %v1342_v1 = vadd.f32 %v1340_v26, %v3400_v19  ;;  %v1356_v63 = vmul.f32 %v2885_v27, %v1352_v24  ;;  %v1346_v29 = vsub.f32 1.0, %v2885_v27  ;;  %v3795_v26 = vld [vmem:[%s4021_s3 + $0x8] sm:$0xff] }
 0x70f   :  { %2886 = vtanh.f32 %v1341_v3  ;;  %v3801_v3 = vld [vmem:[%s4021_s3 + $0x20] sm:$0xff] }
 0x710   :  { %2888 = vtanh.f32 %v1342_v1 }
 0x719   :  { %v2887_v28 = vpop.eup %2886 }
 0x71a   :  { %v2889_v40 = vpop.eup %2888  ;;  %v1347_v33 = vmul.f32 %v2887_v28, %v1345_v46 }
 0x71b   :  { %v1348_v31 = vmul.f32 %v2889_v40, %v1346_v29 }
 0x71c   :  { %v3621_v39 = vadd.f32 %v1355_v30, %v1347_v33 }
 0x71d   :  { %v3623_v35 = vadd.f32 %v1356_v63, %v1348_v31 }
 0x71e   :  { %v1359_v36 = vpack.c.bf16 %v3621_v39, %v3621_v39 }
 0x71f   :  { %v1360_v6 = vpack.c.bf16 %v3623_v35, %v3623_v35 }
 0x720   :  { %v1363_v19 = vunpack.c.l.b16 %v1359_v36 }
 0x721   :  { %v1364_v37 = vunpack.c.l.b16 %v1360_v6 }
 0x722   :  { %v1365_v38 = vrot.slane %v1363_v19, 4 }
 0x723   :  { %v1366_v41 = vrot.slane %v1364_v37, 3 }
 0x725   :  { %v1367_v42 = vsel %vm746_vm1, %v1366_v41, %v1365_v38  ;;  %v3807_v38 = vld [vmem:[%s4022_s4 + $0x5] ss:$0 sm:$0xff] }
 0x726   :  { %v1368_v43 = vpack.c.b16 %v1367_v42, %v1367_v42 }
 0x728   :  { %1403 = vmatmul.mubr.bf16.vlgmr.msra.gmra.mrb[24].mxu1 %v1368_v43  ;;  %2595 = vmatmul.mubr.bf16.vlgmr.msra.gmra.mrb[28].mxu0 %v1368_v43 }
 0x729   :  { %1527 = vmatpush1.bf16.msra.mxu1 %v3633_v44  ;;  %2599 = vmatpush3.bf16.msra.mxu0 %v3639_v47 }
 0x72a   :  { %1528 = vmatprep.subr.bf16.mxu1 %v3645_v48  ;;  %2600 = vmatprep.subr.bf16.mxu0 %v3007_v2 }
 0x72b   :  { %1558 = vmatprep.mubr.bf16.mxu1 %v3009_v62  ;;  %2614 = vmatprep.mubr.msk.bf16.mxu0 %vm3008_vm0, %v3007_v2 }
 0x72d   :  { %1529 = vmatpush1.bf16.msra.mxu1 %v3655_v49  ;;  %2601 = vmatpush3.bf16.msra.mxu0 %v3661_v50 }
 0x72e   :  { %1530 = vmatprep.subr.bf16.mxu1 %v3667_v51  ;;  %2602 = vmatprep.subr.bf16.mxu0 %v3007_v2 }
 0x731   :  { %1531 = vmatpush1.bf16.msra.mxu1 %v3674_v52  ;;  %2603 = vmatpush3.bf16.msra.mxu0 %v3680_v53 }
 0x732   :  { %1532 = vmatprep.subr.bf16.mxu1 %v3686_v54  ;;  %2604 = vmatprep.subr.bf16.mxu0 %v3007_v2 }
 0x735   :  { %1533 = vmatpush1.bf16.msra.mxu1 %v3693_v55  ;;  %2605 = vmatpush3.bf16.msra.mxu0 %v3699_v56 }
 0x736   :  { %1534 = vmatprep.subr.bf16.mxu1 %v3705_v57  ;;  %2606 = vmatprep.subr.bf16.mxu0 %v3007_v2 }
 0x739   :  { %1535 = vmatpush1.bf16.msra.mxu1 %v3712_v58  ;;  %2607 = vmatpush3.bf16.msra.mxu0 %v3718_v60 }
 0x73a   :  { %1536 = vmatprep.subr.bf16.mxu1 %v3724_v61  ;;  %2608 = vmatprep.subr.bf16.mxu0 %v3007_v2 }
 0x73d   :  { %1537 = vmatpush1.bf16.msra.mxu1 %v3731_v7  ;;  %2609 = vmatpush3.bf16.msra.mxu0 %v3737_v9 }
 0x73e   :  { %1538 = vmatprep.subr.bf16.mxu1 %v3743_v10  ;;  %2610 = vmatprep.subr.bf16.mxu0 %v3007_v2 }
 0x741   :  { %1539 = vmatpush1.bf16.msra.mxu1 %v3750_v11  ;;  %2611 = vmatpush3.bf16.msra.mxu0 %v3756_v12 }
 0x742   :  { %1540 = vmatprep.subr.bf16.mxu1 %v3762_v13  ;;  %2612 = vmatprep.subr.bf16.mxu0 %v3007_v2 }
 0x745   :  { %1541 = vmatpush1.bf16.msra.mxu1 %v3769_v14  ;;  %2613 = vmatpush3.bf16.msra.mxu0 %v3775_v15 }
 0x746   :  { %2618 = vmatprep.subr.bf16.mxu0 %v3007_v2  ;;  %1682 = vmatprep.subr.bf16.mxu1 %v3608_v45  ;;  %v3789_v45 = vld [vmem:[%s4021_s3 + $0x18] sm:$0xff] }
 0x7fb   :  { %v1404_v59 = vpop.f32.mrb[24].mxu1  ;;  %v1445_v20 = vpop.f32.mrb[28].mxu0 }
 0x7fc   :  { %v1452_v0 = vrot.slane %v1404_v59, 3  ;;  %v1453_v22 = vrot.slane %v1404_v59, 4  ;;  %v1406_v4 = vpop.f32.mrb[25].mxu1  ;;  %v2596_v32 = vpop.f32.mrb[29].mxu0  ;;  %v1489_v41 = vadd.f32 %v3807_v38, %v1445_v20 }
 0x7fd   :  { %v1471_v34 = vrot.slane %v1406_v4, 3  ;;  %v1472_v5 = vrot.slane %v1406_v4, 4  ;;  %v1408_v8 = vpop.f32.mrb[26].mxu1  ;;  %v1448_v16 = vpop.f32.mrb[30].mxu0 }
 0x7fe   :  { %v1456_v18 = vadd.f32 %v3783_v17, %v1452_v0  ;;  %v1457_v21 = vadd.f32 %v3789_v45, %v1453_v22  ;;  %v1409_v23 = vpop.f32.mrb[27].mxu1  ;;  %v2597_v24 = vpop.f32.mrb[31].mxu0  ;;  %v1491_v42 = vrot.slane %v1489_v41, 3  ;;  %v1492_v59 = vrot.slane %v1489_v41, 4  ;;  %v3815_v16 = vld [vmem:[%s4021_s3 + $0x10] sm:$0xff] }
 0x7ff   :  { %v1475_v27 = vadd.f32 %v3795_v26, %v1471_v34  ;;  %v1476_v30 = vadd.f32 %v3801_v3, %v1472_v5  ;;  %v1507_v22 = vrot.slane %v3621_v39, 7  ;;  %v1508_v34 = vrot.slane %v3623_v35, 7 }
 0x800   :  { %v2261_v1 = vmul.f32 -1.442695, %v1456_v18  ;;  %v2262_v63 = vmul.f32 -1.442695, %v1457_v21  ;;  %v3821_v21 = vld [vmem:[%s4021_s3 + $0x28] sm:$0xff] }
 0x801   :  { %v2263_v46 = vmul.f32 -1.442695, %v1475_v27  ;;  %v2264_v28 = vmul.f32 -1.442695, %v1476_v30 }
 0x802   :  { %2890 = vpow2.f32 %v2261_v1 }
 0x803   :  { %2892 = vpow2.f32 %v2262_v63 }
 0x804   :  { %2894 = vpow2.f32 %v2263_v46 }
 0x805   :  { %2896 = vpow2.f32 %v2264_v28 }
 0x80c   :  { %v2891_v29 = vpop.eup %2890 }
 0x80d   :  { %v2893_v40 = vpop.eup %2892  ;;  %v1464_v33 = vadd.f32 1.0, %v2891_v29 }
 0x80e   :  { %v2895_v31 = vpop.eup %2894  ;;  %v1465_v36 = vadd.f32 1.0, %v2893_v40 }
 0x80f   :  { %v2897_v6 = vpop.eup %2896  ;;  %2898 = vrcp.f32 %v1464_v33  ;;  %v1483_v19 = vadd.f32 1.0, %v2895_v31 }
 0x810   :  { %2900 = vrcp.f32 %v1465_v36  ;;  %v1484_v37 = vadd.f32 1.0, %v2897_v6 }
 0x811   :  { %2902 = vrcp.f32 %v1483_v19 }
 0x812   :  { %2904 = vrcp.f32 %v1484_v37 }
 0x819   :  { %v2899_v43 = vpop.eup %2898 }
 0x81a   :  { %v2901_v0 = vpop.eup %2900  ;;  %v1495_v4 = vmul.f32 %v2899_v43, %v1491_v42 }
 0x81b   :  { %v2903_v32 = vpop.eup %2902  ;;  %v1496_v5 = vmul.f32 %v2901_v0, %v1492_v59 }
 0x81c   :  { %v2905_v8 = vpop.eup %2904  ;;  %v1497_v18 = vadd.f32 %v3815_v16, %v1495_v4  ;;  %v1511_v20 = vmul.f32 %v2903_v32, %v1507_v22  ;;  %v1501_v35 = vsub.f32 1.0, %v2903_v32 }
 0x81d   :  { %v1498_v39 = vadd.f32 %v3821_v21, %v1496_v5  ;;  %v1512_v23 = vmul.f32 %v2905_v8, %v1508_v34  ;;  %v1502_v27 = vsub.f32 1.0, %v2905_v8 }
 0x81e   :  { %2906 = vtanh.f32 %v1497_v18 }
 0x81f   :  { %2908 = vtanh.f32 %v1498_v39 }
 0x828   :  { %v2907_v24 = vpop.eup %2906 }
 0x829   :  { %v2909_v30 = vpop.eup %2908  ;;  %v1503_v1 = vmul.f32 %v2907_v24, %v1501_v35 }
 0x82a   :  { %v1504_v63 = vmul.f32 %v2909_v30, %v1502_v27 }
 0x82b   :  { %v3824_v46 = vadd.f32 %v1511_v20, %v1503_v1 }
 0x82c   :  { %v3826_v28 = vadd.f32 %v1512_v23, %v1504_v63 }
 0x82d   :  { %v1515_v29 = vpack.c.bf16 %v3824_v46, %v3824_v46  ;;  %v1663_v5 = vrot.slane %v3824_v46, 7 }
 0x82e   :  { %v1516_v40 = vpack.c.bf16 %v3826_v28, %v3826_v28  ;;  %v1664_v20 = vrot.slane %v3826_v28, 7 }
 0x82f   :  { %v1519_v33 = vunpack.c.l.b16 %v1515_v29 }
 0x830   :  { %v1520_v31 = vunpack.c.l.b16 %v1516_v40 }
 0x831   :  { %v1521_v36 = vrot.slane %v1519_v33, 5 }
 0x832   :  { %v1522_v6 = vrot.slane %v1520_v31, 4 }
 0x834   :  { %v1523_v19 = vsel %vm746_vm1, %v1522_v6, %v1521_v36 }
 0x835   :  { %v1524_v37 = vpack.c.b16 %v1523_v19, %v1523_v19 }
 0x837   :  { %1559 = vmatmul.mubr.bf16.vlgmr.msra.gmra.mrb[28].mxu1 %v1524_v37  ;;  %2615 = vmatmul.mubr.bf16.vlgmr.msra.gmra.mrb[32].mxu0 %v1524_v37 }
 0x838   :  { %2619 = vmatpush3.bf16.msra.mxu0 %v3639_v47  ;;  %1683 = vmatpush1.bf16.msra.mxu1 %v3633_v44 }
 0x839   :  { %2620 = vmatprep.subr.bf16.mxu0 %v3007_v2  ;;  %1684 = vmatprep.subr.bf16.mxu1 %v3645_v48 }
 0x83a   :  { %1714 = vmatprep.mubr.bf16.mxu1 %v3009_v62  ;;  %2634 = vmatprep.mubr.msk.bf16.mxu0 %vm3008_vm0, %v3007_v2 }
 0x83c   :  { %2621 = vmatpush3.bf16.msra.mxu0 %v3661_v50  ;;  %1685 = vmatpush1.bf16.msra.mxu1 %v3655_v49 }
 0x83d   :  { %2622 = vmatprep.subr.bf16.mxu0 %v3007_v2  ;;  %1686 = vmatprep.subr.bf16.mxu1 %v3667_v51 }
 0x840   :  { %2623 = vmatpush3.bf16.msra.mxu0 %v3680_v53  ;;  %1687 = vmatpush1.bf16.msra.mxu1 %v3674_v52 }
 0x841   :  { %2624 = vmatprep.subr.bf16.mxu0 %v3007_v2  ;;  %1688 = vmatprep.subr.bf16.mxu1 %v3686_v54 }
 0x844   :  { %2625 = vmatpush3.bf16.msra.mxu0 %v3699_v56  ;;  %1689 = vmatpush1.bf16.msra.mxu1 %v3693_v55 }
 0x845   :  { %2626 = vmatprep.subr.bf16.mxu0 %v3007_v2  ;;  %1690 = vmatprep.subr.bf16.mxu1 %v3705_v57 }
 0x848   :  { %2627 = vmatpush3.bf16.msra.mxu0 %v3718_v60  ;;  %1691 = vmatpush1.bf16.msra.mxu1 %v3712_v58 }
 0x849   :  { %2628 = vmatprep.subr.bf16.mxu0 %v3007_v2  ;;  %1692 = vmatprep.subr.bf16.mxu1 %v3724_v61 }
 0x84c   :  { %2629 = vmatpush3.bf16.msra.mxu0 %v3737_v9  ;;  %1693 = vmatpush1.bf16.msra.mxu1 %v3731_v7 }
 0x84d   :  { %2630 = vmatprep.subr.bf16.mxu0 %v3007_v2  ;;  %1694 = vmatprep.subr.bf16.mxu1 %v3743_v10 }
 0x850   :  { %2631 = vmatpush3.bf16.msra.mxu0 %v3756_v12  ;;  %1695 = vmatpush1.bf16.msra.mxu1 %v3750_v11 }
 0x851   :  { %2632 = vmatprep.subr.bf16.mxu0 %v3007_v2  ;;  %1696 = vmatprep.subr.bf16.mxu1 %v3762_v13 }
 0x854   :  { %2633 = vmatpush3.bf16.msra.mxu0 %v3775_v15  ;;  %1697 = vmatpush1.bf16.msra.mxu1 %v3769_v14 }
 0x855   :  { %2658 = vmatprep.subr.bf16.mxu0 %v3007_v2  ;;  %2638 = vmatprep.subr.bf16.mxu1 %v3007_v2 }
 0x90a   :  { %v1560_v62 = vpop.f32.mrb[28].mxu1  ;;  %v1601_v44 = vpop.f32.mrb[32].mxu0 }
 0x90b   :  { %v1608_v47 = vrot.slane %v1560_v62, 2  ;;  %v1609_v48 = vrot.slane %v1560_v62, 3  ;;  %v1562_v49 = vpop.f32.mrb[29].mxu1  ;;  %v2616_v50 = vpop.f32.mrb[33].mxu0  ;;  %v1645_v0 = vadd.f32 %v3807_v38, %v1601_v44 }
 0x90c   :  { %v1627_v51 = vrot.slane %v1562_v49, 2  ;;  %v1628_v52 = vrot.slane %v1562_v49, 3  ;;  %v1564_v53 = vpop.f32.mrb[30].mxu1  ;;  %v1604_v54 = vpop.f32.mrb[34].mxu0  ;;  %v2767_v50 = vld [vmem:[%s4019_s1 + $0x108] sm:$0xff]  }
 0x90d   :  { %v1612_v55 = vadd.f32 %v3783_v17, %v1608_v47  ;;  %v1613_v56 = vadd.f32 %v3789_v45, %v1609_v48  ;;  %v1565_v57 = vpop.f32.mrb[31].mxu1  ;;  %v2617_v58 = vpop.f32.mrb[35].mxu0  ;;  %v1647_v22 = vrot.slane %v1645_v0, 2  ;;  %v1648_v32 = vrot.slane %v1645_v0, 3  ;;  %v2766_v48 = vld [vmem:[%s4019_s1 + $0x100] sm:$0xff]   ;;  %v2771_v54 = vld [vmem:[%s4019_s1 + $0x128] sm:$0xff]  }
 0x90e   :  { %v1631_v60 = vadd.f32 %v3795_v26, %v1627_v51  ;;  %v1632_v61 = vadd.f32 %v3801_v3, %v1628_v52  ;;  %v2768_v51 = vld [vmem:[%s4019_s1 + $0x110] sm:$0xff]   ;;  %v2769_v52 = vld [vmem:[%s4019_s1 + $0x118] sm:$0xff]   ;;  %v2770_v53 = vld [vmem:[%s4019_s1 + $0x120] sm:$0xff]  }
 0x90f   :  { %v2265_v7 = vmul.f32 -1.442695, %v1612_v55  ;;  %v2266_v9 = vmul.f32 -1.442695, %v1613_v56  ;;  %v2207_v55 = vld [vmem:[%s4022_s4 + $0x2] ss:$0 sm:$0xff] }
 0x910   :  { %v2267_v10 = vmul.f32 -1.442695, %v1631_v60  ;;  %v2268_v11 = vmul.f32 -1.442695, %v1632_v61  ;;  %v2772_v56 = vld [vmem:[%s4019_s1 + $0x130] sm:$0xff]   ;;  %v426_v57 = vadd.f32 %v2207_v55, %v3372_v25  ;;  %v2773_v58 = vld [vmem:[%s4019_s1 + $0x138] sm:$0xff]  }
 0x911   :  { %2910 = vpow2.f32 %v2265_v7  ;;  %v2774_v7 = vld [vmem:[%s4019_s1 + $0x140] sm:$0xff]   ;;  %v2775_v25 = vld [vmem:[%s4019_s1 + $0x148] sm:$0xff]  }
 0x912   :  { %2912 = vpow2.f32 %v2266_v9  ;;  %v431_v60 = vmax.f32 %v426_v57, 0.0  ;;  %v2776_v9 = vld [vmem:[%s4019_s1 + $0x150] sm:$0xff]  }
 0x913   :  { %2914 = vpow2.f32 %v2267_v10  ;;  %v2777_v10 = vld [vmem:[%s4019_s1 + $0x158] sm:$0xff]  }
 0x914   :  { %2916 = vpow2.f32 %v2268_v11  ;;  %v1827_v61 = vpack.c.bf16 %v431_v60, %v431_v60  ;;  %v2778_v11 = vld [vmem:[%s4019_s1 + $0x160] sm:$0xff]  }
 0x91b   :  { %v2911_v12 = vpop.eup %2910 }
 0x91c   :  { %v2913_v13 = vpop.eup %2912  ;;  %v1620_v14 = vadd.f32 1.0, %v2911_v12  ;;  %v2779_v12 = vld [vmem:[%s4019_s1 + $0x168] sm:$0xff]  }
 0x91d   :  { %v2915_v15 = vpop.eup %2914  ;;  %v1621_v41 = vadd.f32 1.0, %v2913_v13  ;;  %v2780_v13 = vld [vmem:[%s4019_s1 + $0x170] sm:$0xff]  }
 0x91e   :  { %v2917_v42 = vpop.eup %2916  ;;  %2918 = vrcp.f32 %v1620_v14  ;;  %v1639_v43 = vadd.f32 1.0, %v2915_v15  ;;  %v2781_v14 = vld [vmem:[%s4019_s1 + $0x178] sm:$0xff]  }
 0x91f   :  { %2920 = vrcp.f32 %v1621_v41  ;;  %v1640_v59 = vadd.f32 1.0, %v2917_v42 }
 0x920   :  { %2922 = vrcp.f32 %v1639_v43 }
 0x921   :  { %2924 = vrcp.f32 %v1640_v59 }
 0x928   :  { %v2919_v4 = vpop.eup %2918 }
 0x929   :  { %v2921_v34 = vpop.eup %2920  ;;  %v1651_v8 = vmul.f32 %v2919_v4, %v1647_v22 }
 0x92a   :  { %v2923_v18 = vpop.eup %2922  ;;  %v1652_v39 = vmul.f32 %v2921_v34, %v1648_v32 }
 0x92b   :  { %v2925_v23 = vpop.eup %2924  ;;  %v1653_v35 = vadd.f32 %v3815_v16, %v1651_v8  ;;  %v1667_v24 = vmul.f32 %v2923_v18, %v1663_v5  ;;  %v1657_v1 = vsub.f32 1.0, %v2923_v18 }
 0x92c   :  { %v1654_v27 = vadd.f32 %v3821_v21, %v1652_v39  ;;  %v1668_v30 = vmul.f32 %v2925_v23, %v1664_v20  ;;  %v1658_v29 = vsub.f32 1.0, %v2925_v23 }
 0x92d   :  { %2926 = vtanh.f32 %v1653_v35 }
 0x92e   :  { %2928 = vtanh.f32 %v1654_v27 }
 0x937   :  { %v2927_v63 = vpop.eup %2926 }
 0x938   :  { %v2929_v40 = vpop.eup %2928  ;;  %v1659_v33 = vmul.f32 %v2927_v63, %v1657_v1 }
 0x939   :  { %v1660_v46 = vmul.f32 %v2929_v40, %v1658_v29 }
 0x93a   :  { %v3877_v31 = vadd.f32 %v1667_v24, %v1659_v33 }
 0x93b   :  { %v3879_v36 = vadd.f32 %v1668_v30, %v1660_v46 }
 0x93c   :  { %v1671_v28 = vpack.c.bf16 %v3877_v31, %v3877_v31 }
 0x93d   :  { %v1672_v6 = vpack.c.bf16 %v3879_v36, %v3879_v36 }
 0x93e   :  { %v1675_v19 = vunpack.c.l.b16 %v1671_v28 }
 0x93f   :  { %v1676_v37 = vunpack.c.l.b16 %v1672_v6 }
 0x940   :  { %v1677_v62 = vrot.slane %v1675_v19, 6 }
 0x941   :  { %v1678_v44 = vrot.slane %v1676_v37, 5  ;;  %v1819_v37 = vrot.slane %v3877_v31, 7 }
 0x943   :  { %v1679_v47 = vsel %vm746_vm1, %v1678_v44, %v1677_v62 }
 0x944   :  { %v1680_v49 = vpack.c.b16 %v1679_v47, %v1679_v47  ;;  %v1820_v47 = vrot.slane %v3879_v36, 7 }
 0x946   :  { %1715 = vmatmul.mubr.bf16.vlgmr.msra.gmra.mrb[32].mxu1 %v1680_v49  ;;  %2635 = vmatmul.mubr.bf16.vlgmr.msra.gmra.mrb[36].mxu0 %v1680_v49 }
 0x947   :  { %2659 = vmatpush3.bf16.msra.mxu0 %v2766_v48  ;;  %2674 = vmatprep.mubr.msk.bf16.mxu0 %vm3008_vm0, %v3007_v2 }
 0x948   :  { %2660 = vmatprep.subr.bf16.mxu0 %v3007_v2  ;;  %2654 = vmatprep.mubr.msk.bf16.mxu1 %vm3008_vm0, %v3007_v2 }
 0x949   :  { %2639 = vmatpush3.bf16.msra.mxu1 %v2774_v7 }
 0x94a   :  { %2640 = vmatprep.subr.bf16.mxu1 %v3007_v2 }
 0x94b   :  { %2661 = vmatpush3.bf16.msra.mxu0 %v2767_v50 }
 0x94c   :  { %2662 = vmatprep.subr.bf16.mxu0 %v3007_v2 }
 0x94d   :  { %2641 = vmatpush3.bf16.msra.mxu1 %v2775_v25 }
 0x94e   :  { %2642 = vmatprep.subr.bf16.mxu1 %v3007_v2 }
 0x94f   :  { %2663 = vmatpush3.bf16.msra.mxu0 %v2768_v51 }
 0x950   :  { %2664 = vmatprep.subr.bf16.mxu0 %v3007_v2 }
 0x951   :  { %2643 = vmatpush3.bf16.msra.mxu1 %v2776_v9 }
 0x952   :  { %2644 = vmatprep.subr.bf16.mxu1 %v3007_v2 }
 0x953   :  { %2665 = vmatpush3.bf16.msra.mxu0 %v2769_v52 }
 0x954   :  { %2666 = vmatprep.subr.bf16.mxu0 %v3007_v2 }
 0x955   :  { %2645 = vmatpush3.bf16.msra.mxu1 %v2777_v10 }
 0x956   :  { %2646 = vmatprep.subr.bf16.mxu1 %v3007_v2 }
 0x957   :  { %2667 = vmatpush3.bf16.msra.mxu0 %v2770_v53 }
 0x958   :  { %2668 = vmatprep.subr.bf16.mxu0 %v3007_v2 }
 0x959   :  { %2647 = vmatpush3.bf16.msra.mxu1 %v2778_v11 }
 0x95a   :  { %2648 = vmatprep.subr.bf16.mxu1 %v3007_v2 }
 0x95b   :  { %2669 = vmatpush3.bf16.msra.mxu0 %v2771_v54 }
 0x95c   :  { %2670 = vmatprep.subr.bf16.mxu0 %v3007_v2 }
 0x95d   :  { %2649 = vmatpush3.bf16.msra.mxu1 %v2779_v12 }
 0x95e   :  { %2650 = vmatprep.subr.bf16.mxu1 %v3007_v2 }
 0x95f   :  { %2671 = vmatpush3.bf16.msra.mxu0 %v2772_v56 }
 0x960   :  { %2672 = vmatprep.subr.bf16.mxu0 %v3007_v2 }
 0x961   :  { %2651 = vmatpush3.bf16.msra.mxu1 %v2780_v13 }
 0x962   :  { %2652 = vmatprep.subr.bf16.mxu1 %v3007_v2 }
 0x963   :  { %2673 = vmatpush3.bf16.msra.mxu0 %v2773_v58 }
 0x965   :  { %2653 = vmatpush3.bf16.msra.mxu1 %v2781_v14  ;;  %v2782_v14 = vld [vmem:[%s4019_s1 + $0x180] sm:$0xff]  }
 0x966   :  { %2675 = vmatmul.mubr.bf16.vlgmr.msra.gmra.mrb[40].mxu0 %v1827_v61  ;;  %2678 = vmatprep.subr.bf16.mxu1 %v3007_v2 }
 0xa19   :  { %v1716_v15 = vpop.f32.mrb[32].mxu1  ;;  %v1757_v41 = vpop.f32.mrb[36].mxu0 }
 0xa1a   :  { %v1764_v42 = vrot.slane %v1716_v15, 1  ;;  %v1765_v43 = vrot.slane %v1716_v15, 2  ;;  %v1718_v59 = vpop.f32.mrb[33].mxu1  ;;  %v2636_v0 = vpop.f32.mrb[37].mxu0 }
 0xa1b   :  { %v1783_v22 = vrot.slane %v1718_v59, 1  ;;  %v1784_v4 = vrot.slane %v1718_v59, 2  ;;  %v1720_v32 = vpop.f32.mrb[34].mxu1  ;;  %v1760_v34 = vpop.f32.mrb[38].mxu0  ;;  %v2786_v59 = vld [vmem:[%s4019_s1 + $0x1a0] sm:$0xff]   ;;  %v2787_v0 = vld [vmem:[%s4019_s1 + $0x1a8] sm:$0xff]  }
 0xa1c   :  { %v1768_v5 = vadd.f32 %v3783_v17, %v1764_v42  ;;  %v1769_v8 = vadd.f32 %v3789_v45, %v1765_v43  ;;  %v1721_v18 = vpop.f32.mrb[35].mxu1  ;;  %v2637_v20 = vpop.f32.mrb[39].mxu0  ;;  %v2784_v42 = vld [vmem:[%s4019_s1 + $0x190] sm:$0xff]   ;;  %v2785_v43 = vld [vmem:[%s4019_s1 + $0x198] sm:$0xff]   ;;  %v2289_v34 = vld [vmem:[%s4022_s4 + $0x3] ss:$0 sm:$0xff] }
 0xa1d   :  { %v1787_v39 = vadd.f32 %v3795_v26, %v1783_v22  ;;  %v1788_v23 = vadd.f32 %v3801_v3, %v1784_v4  ;;  %v1801_v3 = vadd.f32 %v3807_v38, %v1757_v41  ;;  %v2783_v41 = vld [vmem:[%s4019_s1 + $0x188] sm:$0xff]   ;;  %v2788_v22 = vld [vmem:[%s4019_s1 + $0x1b0] sm:$0xff]   ;;  %v2789_v4 = vld [vmem:[%s4019_s1 + $0x1b8] sm:$0xff]   ;;  %s3010_s1 = smov [#allocation2]  }
 0xa1e   :  { %v2269_v35 = vmul.f32 -1.442695, %v1768_v5  ;;  %v2270_v24 = vmul.f32 -1.442695, %v1769_v8  ;;  %s2172_s27 = sshll.u32 %s3010_s1, 4  ;;  %s2173_s27 = int_to_ptr.vmem [resolvable:$true] %s2172_s27 }
 0xa1f   :  { %v2271_v27 = vmul.f32 -1.442695, %v1787_v39  ;;  %v2272_v30 = vmul.f32 -1.442695, %v1788_v23  ;;  %v1803_v46 = vrot.slane %v1801_v3, 1  ;;  %v1804_v6 = vrot.slane %v1801_v3, 2  ;;  %p2988_p1 = scmp.lt.s32.totalorder %s2173_s27, %s2173_s27 }
 0xa20   :  { %2930 = vpow2.f32 %v2269_v35  ;;  %s2983_s28 = scalar_lea.vmem %s2173_s27, 32 }
 0xa21   :  { %2932 = vpow2.f32 %v2270_v24  ;;  %p2984_p0 = scmp.ne.s32.totalorder %s2173_s27, %s2983_s28  ;;  %p2989_p2 = scmp.lt.s32.totalorder %s2983_s28, %s2983_s28 }
 0xa22   :  { %2934 = vpow2.f32 %v2271_v27 }
 0xa23   :  { %2936 = vpow2.f32 %v2272_v30  ;;  %p2990_p3 = por %p2989_p2, %p2988_p1 }
 0xa25   :  { %p2991_p4 = pnand %p2990_p3, %p2984_p0 }
 0xa2a   :  { %v2931_v1 = vpop.eup %2930 }
 0xa2b   :  { %v2933_v63 = vpop.eup %2932  ;;  %v1776_v29 = vadd.f32 1.0, %v2931_v1 }
 0xa2c   :  { %v2935_v17 = vpop.eup %2934  ;;  %v1777_v40 = vadd.f32 1.0, %v2933_v63 }
 0xa2d   :  { %v2937_v45 = vpop.eup %2936  ;;  %2938 = vrcp.f32 %v1776_v29  ;;  %v1795_v33 = vadd.f32 1.0, %v2935_v17 }
 0xa2e   :  { %2940 = vrcp.f32 %v1777_v40  ;;  %v1796_v26 = vadd.f32 1.0, %v2937_v45 }
 0xa2f   :  { %2942 = vrcp.f32 %v1795_v33 }
 0xa30   :  { %2944 = vrcp.f32 %v1796_v26 }
 0xa37   :  { %v2939_v28 = vpop.eup %2938 }
 0xa38   :  { %v2941_v19 = vpop.eup %2940  ;;  %v1807_v62 = vmul.f32 %v2939_v28, %v1803_v46 }
 0xa39   :  { %v2943_v44 = vpop.eup %2942  ;;  %v1808_v48 = vmul.f32 %v2941_v19, %v1804_v6  ;;  %v2041_v49 = vpop.f32.mrb[40].mxu0 }
 0xa3a   :  { %v2945_v50 = vpop.eup %2944  ;;  %v1809_v51 = vadd.f32 %v3815_v16, %v1807_v62  ;;  %v2676_v52 = vpop.f32.mrb[41].mxu0  ;;  %v1823_v53 = vmul.f32 %v2943_v44, %v1819_v37  ;;  %v1813_v57 = vsub.f32 1.0, %v2943_v44 }
 0xa3b   :  { %v1810_v54 = vadd.f32 %v3821_v21, %v1808_v48  ;;  %v2044_v38 = vpop.f32.mrb[42].mxu0  ;;  %v1824_v55 = vmul.f32 %v2945_v50, %v1820_v47  ;;  %v1814_v58 = vsub.f32 1.0, %v2945_v50 }
 0xa3c   :  { %2946 = vtanh.f32 %v1809_v51  ;;  %v2677_v56 = vpop.f32.mrb[43].mxu0 }
 0xa3d   :  { %2948 = vtanh.f32 %v1810_v54 }
 0xa46   :  { %v2947_v31 = vpop.eup %2946 }
 0xa47   :  { %v2949_v60 = vpop.eup %2948  ;;  %v1815_v61 = vmul.f32 %v2947_v31, %v1813_v57 }
 0xa48   :  { %v1816_v36 = vmul.f32 %v2949_v60, %v1814_v58 }
 0xa49   :  { %v1825_v7 = vadd.f32 %v1823_v53, %v1815_v61 }
 0xa4a   :  { %v1826_v25 = vadd.f32 %v1824_v55, %v1816_v36 }
 0xa4b   :  { %v1844_v9 = vpack.c.bf16 %v1825_v7, %v1825_v7 }
 0xa4c   :  { %v1845_v10 = vpack.c.bf16 %v1826_v25, %v1826_v25 }
 0xa4d   :  { %v1864_v16 = vunpack.c.l.b16 %v1844_v9 }
 0xa4e   :  { %v1865_v11 = vunpack.c.l.b16 %v1845_v10 }
 0xa4f   :  { %v1866_v12 = vrot.slane %v1864_v16, 7 }
 0xa50   :  { %v1867_v13 = vrot.slane %v1865_v11, 6 }
 0xa52   :  { %v1868_v21 = vsel %vm746_vm1, %v1867_v13, %v1866_v12 }
 0xa53   :  { %v1869_v15 = vpack.c.b16 %v1868_v21, %v1868_v21 }
 0xa55   :  { %2655 = vmatmul.mubr.bf16.vlgmr.msra.gmra.mrb[36].mxu1 %v1869_v15 }
 0xa56   :  { %2679 = vmatpush3.bf16.msra.mxu1 %v2782_v14  ;;  %2694 = vmatprep.mubr.msk.bf16.mxu1 %vm3008_vm0, %v3007_v2 }
 0xa57   :  { %2680 = vmatprep.subr.bf16.mxu1 %v3007_v2 }
 0xa5a   :  { %2681 = vmatpush3.bf16.msra.mxu1 %v2783_v41 }
 0xa5b   :  { %2682 = vmatprep.subr.bf16.mxu1 %v3007_v2 }
 0xa5e   :  { %2683 = vmatpush3.bf16.msra.mxu1 %v2784_v42 }
 0xa5f   :  { %2684 = vmatprep.subr.bf16.mxu1 %v3007_v2 }
 0xa62   :  { %2685 = vmatpush3.bf16.msra.mxu1 %v2785_v43 }
 0xa63   :  { %2686 = vmatprep.subr.bf16.mxu1 %v3007_v2 }
 0xa66   :  { %2687 = vmatpush3.bf16.msra.mxu1 %v2786_v59 }
 0xa67   :  { %2688 = vmatprep.subr.bf16.mxu1 %v3007_v2 }
 0xa6a   :  { %2689 = vmatpush3.bf16.msra.mxu1 %v2787_v0 }
 0xa6b   :  { %2690 = vmatprep.subr.bf16.mxu1 %v3007_v2 }
 0xa6e   :  { %2691 = vmatpush3.bf16.msra.mxu1 %v2788_v22 }
 0xa6f   :  { %2692 = vmatprep.subr.bf16.mxu1 %v3007_v2  ;;  %v2290_v2 = vld [vmem:[%s4022_s4 + $0x4] ss:$0 sm:$0xff] }
 0xa72   :  { %2693 = vmatpush3.bf16.msra.mxu1 %v2789_v4 }
 0xb28   :  { %v1953_v32 = vpop.f32.mrb[36].mxu1 }
 0xb29   :  { %v2042_v5 = vadd.f32 %v2041_v49, %v1953_v32  ;;  %v2656_v8 = vpop.f32.mrb[37].mxu1 }
 0xb2a   :  { %v1956_v18 = vpop.f32.mrb[38].mxu1 }
 0xb2b   :  { %v2052_v20 = vadd.f32 %v2289_v34, %v2042_v5  ;;  %v2657_v39 = vpop.f32.mrb[39].mxu1 }
 0xb2d   :  { %2950 = vtanh.f32 %v2052_v20 }
 0xb37   :  { %v2951_v23 = vpop.eup %2950 }
 0xb38   :  { %v2054_v35 = vpack.c.bf16 %v2951_v23, %v2951_v23 }
 0xb3a   :  { %2695 = vmatmul.mubr.bf16.vlgmr.msra.gmra.mrb[40].mxu1 %v2054_v35 }
 0xc0d   :  { %v2158_v24 = vpop.f32.mrb[40].mxu1 }
 0xc0e   :  { %v2159_v27 = vadd.f32 %v2290_v2, %v2158_v24  ;;  %v2696_v30 = vpop.f32.mrb[41].mxu1 }
 0xc0f   :  { %v2161_v1 = vpop.f32.mrb[42].mxu1 }
 0xc10   :  { %v2697_v63 = vpop.f32.mrb[43].mxu1  ;;  %2165 = vst.msk [vmem:[#allocation2] sm:$0x3] %vm2164_vm2, %v2159_v27 }
 0xc11   :  { %2994 = shalt.err (!%p2991_p4)
}
 0xc12   :  { %s2995_s4 = scalar_lea.hbm %s4023_s5, 32 }
 0xc13   :  { %p2996_p5 = scmp.ne.s32.totalorder %s4023_s5, %s2995_s4  ;;  %p2999_p6 = scmp.lt.u32.totalorder %s2995_s4, %s4023_s5 }
 0xc15   :  { %p3001_p7 = pnand %p2999_p6, %p2996_p5 }
 0xc17   :  { %3004 = shalt.err (!%p3001_p7)
}
 0xc18   :  { %2175 = dma.vmem_to_hbm [thread:$0]  %s2173_s27, 32, %s4023_s5, [#allocation3]  }
 0xc19   :  { %3005 = dma.done.wait [#allocation3], 32  }
 0xc1a   :  { %3006 = vsyncadd [#allocation3], 4294967264 }
 0xc1b   :  { %2179 = vsyncpa [#allocation3], 1 }

</bundles_post_ra>
